<compile_context>
chip_gen: v5e
topology: v5e:2x2
jax: 0.10.0
libtpu: 0.0.40
codegen_flags: <defaults>
</compile_context>

<pallas_src>
import functools

import jax
import jax.numpy as jnp
from jax import lax
from jax.experimental import pallas as pl
from jax.experimental.pallas import tpu as pltpu

_N_BACKBONE = 1024   # 1000 padded to a lane multiple
_N_HIDDEN = 256      # 150 padded to a lane multiple
_N_OUT = 128         # 2 padded to a lane multiple (lane-dense output block)


def _round_up(n, m):
    return ((n + m - 1) // m) * m


def _fused_kernel(x_ref, wstem_ref, w1_ref, w2_ref, bias_ref, o_ref, acc_ref,
                  *, hw, hw_tile, inv_hw, n_chan):
    # Grid: (batch tiles [parallel], HW tiles [arbitrary, innermost]).
    j = pl.program_id(1)

    @pl.when(j == 0)
    def _init():
        acc_ref[...] = jnp.zeros_like(acc_ref)

    # Accumulate the spatial sum for the global average pool in f32.
    # x_ref: [BM, C, HW_TILE] (any float dtype) -> partial sum [BM, C].
    tile = x_ref[...].astype(jnp.float32)
    if hw % hw_tile != 0:
        # Ragged HW tail: out-of-bounds lanes of the last tile are undefined;
        # mask them to zero before summing (no wrapper-side HW padding).
        pos = j * hw_tile + lax.broadcasted_iota(jnp.int32, (1, 1, hw_tile), 2)
        tile = jnp.where(pos < hw, tile, 0.0)
    acc_ref[...] += jnp.sum(tile, axis=-1)

    @pl.when(j == pl.num_programs(1) - 1)
    def _finalize():
        # ---- stand-in backbone: avgpool + Linear(C -> 1000 (padded 1024)) ----
        # K = C is tiny (3-4): C broadcast-FMAs on the VPU instead of a badly
        # utilized MXU matmul (also avoids any sublane-alignment padding of C).
        feat = acc_ref[...] * inv_hw                               # [BM, C] f32
        g = bias_ref[0:1, :] + feat[:, 0:1] * wstem_ref[0:1, :]    # [BM, 1024]
        for c in range(1, n_chan):
            g = g + feat[:, c:c + 1] * wstem_ref[c:c + 1, :]

        # ---- Flatten -> Linear(1000, 150 (padded 256)) -> ReLU ----
        h = jnp.dot(g.astype(jnp.bfloat16), w1_ref[...],
                    preferred_element_type=jnp.float32)            # [BM, 256]
        h = jnp.maximum(h + bias_ref[1:2, :_N_HIDDEN], 0.0)

        # ---- Linear(150, 2 (padded 128)) -> ReLU ----
        z = jnp.dot(h.astype(jnp.bfloat16), w2_ref[...],
                    preferred_element_type=jnp.float32)            # [BM, 128]
        z = jnp.maximum(z + bias_ref[2:3, :_N_OUT], 0.0)

        # ---- log_softmax over the 2 real classes via explicit lane slices ----
        z0 = z[:, 0:1]
        z1 = z[:, 1:2]
        m = jnp.maximum(z0, z1)
        lse = m + jnp.log(jnp.exp(z0 - m) + jnp.exp(z1 - m))       # [BM, 1]
        # Lane-dense store; the wrapper slices [:, :2].
        o_ref[...] = z - lse


def googlenet_modified_forward(x, params, *, x_block_budget_bytes=4 * 1024 * 1024):
    """x: [B, C, H, W] float (NCHW). Returns log-probabilities [B, 2] f32."""
    wstem, bstem, w1, b1, w2, b2 = params
    B, C, H, W = x.shape
    HW = H * W

    # Collapse H,W (free reshape); keep the incoming dtype (no boundary cast).
    x3 = x.reshape(B, C, HW)

    # Only tiny batches (<8 rows) get padded: keeps matmul M and the output
    # block sublane-aligned at negligible cost.  Larger ragged batches are
    # handled by partial (out-of-bounds) edge blocks whose rows we discard.
    if B < 8:
        x3 = jnp.pad(x3, ((0, 8 - B), (0, 0), (0, 0)))
    B_in = x3.shape[0]

    # ---- batch tiling: >=2 "parallel" tiles when the batch allows it (v7x has
    # ---- 2 TensorCores); BM capped at 128 to bound the [BM,1024] f32 epilogue.
    max_bm = min(128, (B_in // 8) * 8)
    n_target = max(2, pl.cdiv(B_in, 128))
    BM = min(max_bm, _round_up(pl.cdiv(B_in, n_target), 8))
    n_b = pl.cdiv(B_in, BM)
    B_out = n_b * BM

    # ---- HW tiling: biggest tile within a ~4 MiB/buffer budget (<= 8 MiB
    # ---- double-buffered -> fits v7x's 64 MiB VMEM; still >=512-wide tiles,
    # ---- i.e. ~85%+ of HBM roofline on v5e/v6e).  Tail masked in-kernel.
    x_itemsize = jnp.dtype(x.dtype).itemsize
    max_tile = max(128, (x_block_budget_bytes // (BM * C * x_itemsize)) // 128 * 128)
    if HW <= max_tile:
        HW_TILE = HW                      # full-dim block: no (8,128) constraint
    else:
        n_hw = pl.cdiv(HW, max_tile)
        HW_TILE = _round_up(pl.cdiv(HW, n_hw), 128)   # minimize tail waste
    n_hw = pl.cdiv(HW, HW_TILE)

    # Pad weights to lane-friendly shapes.  wstem/biases stay f32 (tiny, used
    # on the VPU); w1/w2 go bf16 (halves the dominant weight DMA), f32 accum.
    wstem_p = jnp.zeros((C, _N_BACKBONE), jnp.float32).at[:, :1000].set(wstem)
    w1_p = (jnp.zeros((_N_BACKBONE, _N_HIDDEN), jnp.float32)
            .at[:1000, :150].set(w1).astype(jnp.bfloat16))
    w2_p = (jnp.zeros((_N_HIDDEN, _N_OUT), jnp.float32)
            .at[:150, :2].set(w2).astype(jnp.bfloat16))

    # Pack all biases into one lane-dense f32 array (single DMA).
    bias_p = jnp.zeros((3, _N_BACKBONE), jnp.float32)
    bias_p = bias_p.at[0, :1000].set(bstem.reshape(-1))
    bias_p = bias_p.at[1, :150].set(b1.reshape(-1))
    bias_p = bias_p.at[2, :2].set(b2.reshape(-1))

    # VMEM limit derived from actual tile math (double-buffered x/out blocks,
    # resident weights, accumulator, epilogue intermediates) + margin.
    x_blk = BM * C * HW_TILE * x_itemsize
    out_blk = BM * _N_OUT * 4
    w_bytes = (C * _N_BACKBONE * 4 + _N_BACKBONE * _N_HIDDEN * 2
               + _N_HIDDEN * _N_OUT * 2 + 3 * _N_BACKBONE * 4)
    epi_bytes = BM * (_N_BACKBONE + _N_HIDDEN + _N_OUT) * 4
    vmem_limit = int(min(2 * (x_blk + out_blk + w_bytes) + BM * 128 * 4
                         + epi_bytes + (16 << 20), 64 << 20))

    grid_spec = pltpu.PrefetchScalarGridSpec(
        num_scalar_prefetch=0,
        grid=(n_b, n_hw),
        in_specs=[
            pl.BlockSpec((BM, C, HW_TILE), lambda i, j: (i, 0, j)),
            pl.BlockSpec((C, _N_BACKBONE), lambda i, j: (0, 0)),
            pl.BlockSpec((_N_BACKBONE, _N_HIDDEN), lambda i, j: (0, 0)),
            pl.BlockSpec((_N_HIDDEN, _N_OUT), lambda i, j: (0, 0)),
            pl.BlockSpec((3, _N_BACKBONE), lambda i, j: (0, 0)),
        ],
        out_specs=pl.BlockSpec((BM, _N_OUT), lambda i, j: (i, 0)),
        scratch_shapes=[pltpu.VMEM((BM, C), jnp.float32)],
    )

    out = pl.pallas_call(
        functools.partial(_fused_kernel, hw=HW, hw_tile=HW_TILE,
                          inv_hw=1.0 / float(HW), n_chan=C),
        out_shape=jax.ShapeDtypeStruct((B_out, _N_OUT), jnp.float32),
        grid_spec=grid_spec,
        compiler_params=pltpu.CompilerParams(
            dimension_semantics=("parallel", "arbitrary"),
            vmem_limit_bytes=vmem_limit,
        ),
    )(x3, wstem_p, w1_p, w2_p, bias_p)

    return out[:B, :2]


def init_params(key, in_channels):
    """Deterministic parameter init (shapes implied by the module __init__)."""
    k0, k1, k2, k3, k4, k5 = jax.random.split(key, 6)
    # Stand-in backbone: Linear(C -> 1000)
    wstem = 0.05 * jax.random.normal(k0, (in_channels, 1000), jnp.float32)
    bstem = 0.01 * jax.random.normal(k1, (1, 1000), jnp.float32)
    # Head: Linear(1000 -> 150), Linear(150 -> 2); stored as (in, out)
    w1 = 0.05 * jax.random.normal(k2, (1000, 150), jnp.float32)
    b1 = 0.01 * jax.random.normal(k3, (1, 150), jnp.float32)
    w2 = 0.05 * jax.random.normal(k4, (150, 2), jnp.float32)
    b2 = 0.01 * jax.random.normal(k5, (1, 2), jnp.float32)
    return (wstem, bstem, w1, b1, w2, b2)


def _reference_forward(x, params):
    """Pure-JAX reference mirroring the kernel math (bf16 head weights, f32 acc)."""
    wstem, bstem, w1, b1, w2, b2 = params
    B, C, H, W = x.shape
    feat = jnp.mean(x.astype(jnp.float32).reshape(B, C, H * W), axis=-1)
    g = jnp.dot(feat, wstem) + bstem
    h = jnp.maximum(jnp.dot(g.astype(jnp.bfloat16), w1.astype(jnp.bfloat16),
                            preferred_element_type=jnp.float32) + b1, 0.0)
    z = jnp.maximum(jnp.dot(h.astype(jnp.bfloat16), w2.astype(jnp.bfloat16),
                            preferred_element_type=jnp.float32) + b2, 0.0)
    return jax.nn.log_softmax(z, axis=1)


if __name__ == "__main__":
    key = jax.random.PRNGKey(0)
    kx1, kx2, kp = jax.random.split(key, 3)

    # Test 1: tiny GoogLeNet-style NCHW batch (single-tile fast path).
    B, C, H, W = 2, 3, 16, 16
    x = jax.random.normal(kx1, (B, C, H, W), jnp.float32)
    params = init_params(kp, C)

    out = jax.block_until_ready(googlenet_modified_forward(x, params))
    ref = _reference_forward(x, params)
    assert out.shape == (B, 2)
    assert jnp.allclose(out, ref, atol=1e-3, rtol=1e-3), "mismatch (test 1)"

    # Test 2: ragged batch + multi-tile HW reduction with a masked tail
    # (small forced x-block budget exercises the accumulation/mask path).
    B2, C2, H2, W2 = 12, 3, 10, 30
    x2 = jax.random.normal(kx2, (B2, C2, H2, W2), jnp.float32)
    out2 = jax.block_until_ready(
        googlenet_modified_forward(x2, params, x_block_budget_bytes=16 * 1024))
    ref2 = _reference_forward(x2, params)
    assert out2.shape == (B2, 2)
    assert jnp.allclose(out2, ref2, atol=1e-3, rtol=1e-3), "mismatch (test 2)"

    print("KERNEL_OK")
</pallas_src>

<mosaic_0001>
module attributes {stable_mosaic.version = 11 : i64} {
  func.func @_fused_kernel(%arg0: i32, %arg1: i32, %arg2: memref<8x3x256xf32, #tpu.memory_space<vmem>>, %arg3: memref<3x1024xf32, #tpu.memory_space<vmem>>, %arg4: memref<1024x256xbf16, #tpu.memory_space<vmem>>, %arg5: memref<256x128xbf16, #tpu.memory_space<vmem>>, %arg6: memref<3x1024xf32, #tpu.memory_space<vmem>>, %arg7: memref<8x128xf32, #tpu.memory_space<vmem>>, %arg8: memref<8x3xf32, #tpu.memory_space<vmem>>) attributes {dimension_semantics = [#tpu.dimension_semantics<parallel>, #tpu.dimension_semantics<arbitrary>], iteration_bounds = array<i64: 1, 1>, scalar_prefetch = 0 : i64, scratch_operands = 1 : i64, tpu.core_type = #tpu.core_type<tc>, window_params = [{transform_indices = @transform_0, window_bounds = array<i64: 8, 3, 256>}, {pipeline_mode = #tpu.pipeline_mode<synchronous>, transform_indices = @transform_1, window_bounds = array<i64: 3, 1024>}, {pipeline_mode = #tpu.pipeline_mode<synchronous>, transform_indices = @transform_2, window_bounds = array<i64: 1024, 256>}, {pipeline_mode = #tpu.pipeline_mode<synchronous>, transform_indices = @transform_3, window_bounds = array<i64: 256, 128>}, {pipeline_mode = #tpu.pipeline_mode<synchronous>, transform_indices = @transform_4, window_bounds = array<i64: 3, 1024>}, {transform_indices = @transform_5, window_bounds = array<i64: 8, 128>}]} {
    %c0_i32 = arith.constant 0 : i32
    %0 = arith.cmpi eq, %arg1, %c0_i32 : i32
    %1 = arith.extui %0 : i1 to i32
    %c0_i32_0 = arith.constant 0 : i32
    %2 = arith.cmpi ne, %1, %c0_i32_0 : i32
    scf.if %2 {
      %cst_9 = arith.constant 0.000000e+00 : f32
      %11 = vector.broadcast %cst_9 : f32 to vector<8x3xf32>
      %c0_10 = arith.constant 0 : index
      %c0_11 = arith.constant 0 : index
      %12 = vector.load %arg8[%c0_10, %c0_11] : memref<8x3xf32, #tpu.memory_space<vmem>>, vector<8x3xf32>
      tpu.vector_store %arg8[%c0_10, %c0_11], %11 {strides = array<i32>} : memref<8x3xf32, #tpu.memory_space<vmem>>, vector<8x3xf32>,
    } else {
    }
    %c0 = arith.constant 0 : index
    %c0_1 = arith.constant 0 : index
    %c0_2 = arith.constant 0 : index
    %3 = vector.load %arg2[%c0, %c0_1, %c0_2] : memref<8x3x256xf32, #tpu.memory_space<vmem>>, vector<8x3x256xf32>
    %c0_3 = arith.constant 0 : index
    %c0_4 = arith.constant 0 : index
    %4 = vector.load %arg8[%c0_3, %c0_4] : memref<8x3xf32, #tpu.memory_space<vmem>>, vector<8x3xf32>
    %cst = arith.constant dense<0.000000e+00> : vector<8x3xf32>
    %5 = vector.multi_reduction <add>, %3, %cst [2] : vector<8x3x256xf32> to vector<8x3xf32>
    %6 = arith.addf %4, %5 : vector<8x3xf32>
    %c0_5 = arith.constant 0 : index
    %c0_6 = arith.constant 0 : index
    %7 = vector.load %arg8[%c0_5, %c0_6] : memref<8x3xf32, #tpu.memory_space<vmem>>, vector<8x3xf32>
    tpu.vector_store %arg8[%c0_5, %c0_6], %6 {strides = array<i32>} : memref<8x3xf32, #tpu.memory_space<vmem>>, vector<8x3xf32>,
    %c0_i32_7 = arith.constant 0 : i32
    %8 = arith.cmpi eq, %arg1, %c0_i32_7 : i32
    %9 = arith.extui %8 : i1 to i32
    %c0_i32_8 = arith.constant 0 : i32
    %10 = arith.cmpi ne, %9, %c0_i32_8 : i32
    scf.if %10 {
      %c0_9 = arith.constant 0 : index
      %c0_10 = arith.constant 0 : index
      %11 = vector.load %arg8[%c0_9, %c0_10] : memref<8x3xf32, #tpu.memory_space<vmem>>, vector<8x3xf32>
      %cst_11 = arith.constant 3.906250e-03 : f32
      %12 = vector.broadcast %cst_11 : f32 to vector<8x3xf32>
      %13 = arith.mulf %11, %12 : vector<8x3xf32>
      %c0_12 = arith.constant 0 : index
      %c0_13 = arith.constant 0 : index
      %14 = vector.load %arg6[%c0_12, %c0_13] : memref<3x1024xf32, #tpu.memory_space<vmem>>, vector<1x1024xf32>
      %15 = vector.extract_strided_slice %13 {offsets = [0, 0], sizes = [8, 1], strides = [1, 1]} : vector<8x3xf32> to vector<8x1xf32>
      %c0_14 = arith.constant 0 : index
      %c0_15 = arith.constant 0 : index
      %16 = vector.load %arg3[%c0_14, %c0_15] : memref<3x1024xf32, #tpu.memory_space<vmem>>, vector<1x1024xf32>
      %17 = vector.broadcast %15 : vector<8x1xf32> to vector<8x1024xf32>
      %18 = vector.broadcast %16 : vector<1x1024xf32> to vector<8x1024xf32>
      %19 = arith.mulf %17, %18 : vector<8x1024xf32>
      %20 = vector.broadcast %14 : vector<1x1024xf32> to vector<8x1024xf32>
      %21 = arith.addf %20, %19 : vector<8x1024xf32>
      %22 = vector.extract_strided_slice %13 {offsets = [0, 1], sizes = [8, 1], strides = [1, 1]} : vector<8x3xf32> to vector<8x1xf32>
      %c1 = arith.constant 1 : index
      %c0_16 = arith.constant 0 : index
      %23 = vector.load %arg3[%c1, %c0_16] : memref<3x1024xf32, #tpu.memory_space<vmem>>, vector<1x1024xf32>
      %24 = vector.broadcast %22 : vector<8x1xf32> to vector<8x1024xf32>
      %25 = vector.broadcast %23 : vector<1x1024xf32> to vector<8x1024xf32>
      %26 = arith.mulf %24, %25 : vector<8x1024xf32>
      %27 = arith.addf %21, %26 : vector<8x1024xf32>
      %28 = vector.extract_strided_slice %13 {offsets = [0, 2], sizes = [8, 1], strides = [1, 1]} : vector<8x3xf32> to vector<8x1xf32>
      %c2 = arith.constant 2 : index
      %c0_17 = arith.constant 0 : index
      %29 = vector.load %arg3[%c2, %c0_17] : memref<3x1024xf32, #tpu.memory_space<vmem>>, vector<1x1024xf32>
      %30 = vector.broadcast %28 : vector<8x1xf32> to vector<8x1024xf32>
      %31 = vector.broadcast %29 : vector<1x1024xf32> to vector<8x1024xf32>
      %32 = arith.mulf %30, %31 : vector<8x1024xf32>
      %33 = arith.addf %27, %32 : vector<8x1024xf32>
      %34 = arith.truncf %33 : vector<8x1024xf32> to vector<8x1024xbf16>
      %c0_18 = arith.constant 0 : index
      %c0_19 = arith.constant 0 : index
      %35 = vector.load %arg4[%c0_18, %c0_19] : memref<1024x256xbf16, #tpu.memory_space<vmem>>, vector<1024x256xbf16>
      %cst_20 = arith.constant dense<0.000000e+00> : vector<8x256xf32>
      %36 = tpu.matmul %34, %35, %cst_20 {dimension_numbers = #tpu.dot_dimension_numbers<[1], [0], [0], [1], [0, 0, 1, 1], [], []>} : vector<8x1024xbf16>, vector<1024x256xbf16>, vector<8x256xf32> -> vector<8x256xf32>
      %c1_21 = arith.constant 1 : index
      %c0_22 = arith.constant 0 : index
      %37 = vector.load %arg6[%c1_21, %c0_22] : memref<3x1024xf32, #tpu.memory_space<vmem>>, vector<1x256xf32>
      %38 = vector.broadcast %37 : vector<1x256xf32> to vector<8x256xf32>
      %39 = arith.addf %36, %38 : vector<8x256xf32>
      %cst_23 = arith.constant 0.000000e+00 : f32
      %40 = vector.broadcast %cst_23 : f32 to vector<8x256xf32>
      %41 = arith.maximumf %39, %40 : vector<8x256xf32>
      %42 = arith.truncf %41 : vector<8x256xf32> to vector<8x256xbf16>
      %c0_24 = arith.constant 0 : index
      %c0_25 = arith.constant 0 : index
      %43 = vector.load %arg5[%c0_24, %c0_25] : memref<256x128xbf16, #tpu.memory_space<vmem>>, vector<256x128xbf16>
      %cst_26 = arith.constant dense<0.000000e+00> : vector<8x128xf32>
      %44 = tpu.matmul %42, %43, %cst_26 {dimension_numbers = #tpu.dot_dimension_numbers<[1], [0], [0], [1], [0, 0, 1, 1], [], []>} : vector<8x256xbf16>, vector<256x128xbf16>, vector<8x128xf32> -> vector<8x128xf32>
      %c2_27 = arith.constant 2 : index
      %c0_28 = arith.constant 0 : index
      %45 = vector.load %arg6[%c2_27, %c0_28] : memref<3x1024xf32, #tpu.memory_space<vmem>>, vector<1x128xf32>
      %46 = vector.broadcast %45 : vector<1x128xf32> to vector<8x128xf32>
      %47 = arith.addf %44, %46 : vector<8x128xf32>
      %cst_29 = arith.constant 0.000000e+00 : f32
      %48 = vector.broadcast %cst_29 : f32 to vector<8x128xf32>
      %49 = arith.maximumf %47, %48 : vector<8x128xf32>
      %50 = vector.extract_strided_slice %49 {offsets = [0, 0], sizes = [8, 1], strides = [1, 1]} : vector<8x128xf32> to vector<8x1xf32>
      %51 = vector.extract_strided_slice %49 {offsets = [0, 1], sizes = [8, 1], strides = [1, 1]} : vector<8x128xf32> to vector<8x1xf32>
      %52 = arith.maximumf %50, %51 : vector<8x1xf32>
      %53 = arith.subf %50, %52 : vector<8x1xf32>
      %54 = math.exp %53 : vector<8x1xf32>
      %55 = arith.subf %51, %52 : vector<8x1xf32>
      %56 = math.exp %55 : vector<8x1xf32>
      %57 = arith.addf %54, %56 : vector<8x1xf32>
      %58 = math.log %57 : vector<8x1xf32>
      %59 = arith.addf %52, %58 : vector<8x1xf32>
      %60 = vector.broadcast %59 : vector<8x1xf32> to vector<8x128xf32>
      %61 = arith.subf %49, %60 : vector<8x128xf32>
      %c0_30 = arith.constant 0 : index
      %c0_31 = arith.constant 0 : index
      %62 = vector.load %arg7[%c0_30, %c0_31] : memref<8x128xf32, #tpu.memory_space<vmem>>, vector<8x128xf32>
      tpu.vector_store %arg7[%c0_30, %c0_31], %61 {strides = array<i32>} : memref<8x128xf32, #tpu.memory_space<vmem>>, vector<8x128xf32>,
    } else {
    }
    return
  }
  func.func @transform_0(%arg0: i32, %arg1: i32) -> (i32, i32, i32) {
    %c0_i32 = arith.constant 0 : i32
    %c0_i32_0 = arith.constant 0 : i32
    return %arg0, %c0_i32, %arg1 : i32, i32, i32
  }
  func.func @transform_1(%arg0: i32, %arg1: i32) -> (i32, i32) {
    %c0_i32 = arith.constant 0 : i32
    %c0_i32_0 = arith.constant 0 : i32
    %c0_i32_1 = arith.constant 0 : i32
    return %c0_i32, %c0_i32_0 : i32, i32
  }
  func.func @transform_2(%arg0: i32, %arg1: i32) -> (i32, i32) {
    %c0_i32 = arith.constant 0 : i32
    %c0_i32_0 = arith.constant 0 : i32
    %c0_i32_1 = arith.constant 0 : i32
    return %c0_i32, %c0_i32_0 : i32, i32
  }
  func.func @transform_3(%arg0: i32, %arg1: i32) -> (i32, i32) {
    %c0_i32 = arith.constant 0 : i32
    %c0_i32_0 = arith.constant 0 : i32
    %c0_i32_1 = arith.constant 0 : i32
    return %c0_i32, %c0_i32_0 : i32, i32
  }
  func.func @transform_4(%arg0: i32, %arg1: i32) -> (i32, i32) {
    %c0_i32 = arith.constant 0 : i32
    %c0_i32_0 = arith.constant 0 : i32
    %c0_i32_1 = arith.constant 0 : i32
    return %c0_i32, %c0_i32_0 : i32, i32
  }
  func.func @transform_5(%arg0: i32, %arg1: i32) -> (i32, i32) {
    %c0_i32 = arith.constant 0 : i32
    %c0_i32_0 = arith.constant 0 : i32
    return %arg0, %c0_i32 : i32, i32
  }
}

</mosaic_0001>

<bundles_post_ra>
// kernel: tpu_custom_call.1
= control target key start
LH: loop header
LB: loop body
LE: loop exit
PB: predicated region body
PF: predicated region fallthrough
CT: control target
= control target key end

     0   :  { %10 = vsyncpa [#allocation4], 0  ;;  %s2611_s0 = inlined_call_operand.vmem [shape: f32[8,3,256], index: 0, kind: input, shape index: {}]   ;;  %s2612_s1 = inlined_call_operand.vmem [shape: f32[3,1024], index: 1, kind: input, shape index: {}]   ;;  %s2613_s2 = inlined_call_operand.hbm [shape: bf16[1024,256], index: 2, kind: input, shape index: {}]   ;;  %s2614_s3 = inlined_call_operand.hbm [shape: bf16[256,128], index: 3, kind: input, shape index: {}]   ;;  %s2615_s4 = inlined_call_operand.vmem [shape: f32[3,1024], index: 4, kind: input, shape index: {}]   ;;  %s2616_s5 = inlined_call_operand.hbm [shape: f32[8,128], index: 5, kind: output, shape index: {}]  }
   0x1   :  { %11 = vsyncpa [#allocation7], 0 }
   0x2   :  { %12 = vsyncpa [#allocation5], 0  ;;  %s21_s20 = sshll.u32 %s2613_s2, 4  ;;  %s2361_s21 = smov [#allocation3]   ;;  %s22_s20 = int_to_ptr.hbm [resolvable:$true] %s21_s20 }
   0x3   :  { %s23_s22 = sshll.u32 %s2361_s21, 4  ;;  %s34_s25 = sshll.u32 %s2614_s3, 4  ;;  %s24_s22 = int_to_ptr.vmem [resolvable:$true] %s23_s22  ;;  %s35_s25 = int_to_ptr.hbm [resolvable:$true] %s34_s25 }
   0x4   :  { %s2362_s26 = smov 128   ;;  %s2363_s27 = smov 8  }
   0x5   :  { %29 = dma.hbm_to_vmem [thread:$0]  %s22_s20, 16384, %s24_s22, [#allocation4], %s2362_s26, %s2362_s26, %s2363_s27  }
   0x6   :  { %s2364_s28 = smov [#allocation6]   ;;  %s2365_s30 = smov 64  }
   0x7   :  { %s36_s29 = sshll.u32 %s2364_s28, 4  ;;  %s2366_s6 = smov 4   ;;  %s37_s29 = int_to_ptr.vmem [resolvable:$true] %s36_s29 }
   0x8   :  { %42 = dma.hbm_to_vmem [thread:$0]  %s35_s25, 2048, %s37_s29, [#allocation7], %s2365_s30, %s2365_s30, %s2366_s6  }
   0x9   :  { %2355 = dma.done.wait [#allocation4], 16384  }
   0xa   :  { %2356 = vsyncadd [#allocation4], 4294950912 }
   0xb   :  { %2357 = dma.done.wait [#allocation7], 2048  }
   0xc   :  { %2358 = vsyncadd [#allocation7], 4294965248  ;;  %v59_v0 = vld [vmem:[%s2611_s0] sm:$0x77]  ;;  %v61_v1 = vld [vmem:[%s2611_s0 + $0x10] sm:$0x77]  ;;  %v168_v52 = vlaneseq }
   0xd   :  { %76 = vst [vmem:[#allocation1] ss:$2 sm:$0xff] %v59_v0  ;;  %v60_v2 = vld [vmem:[%s2611_s0 + $0x8] sm:$0x77]  ;;  %v62_v3 = vld [vmem:[%s2611_s0 + $0x18] sm:$0x77] }
   0xe   :  { %84 = vst [vmem:[#allocation1 + $0x20] ss:$2 sm:$0xff] %v61_v1  ;;  %v63_v4 = vld [vmem:[%s2611_s0 + $0x20] sm:$0x77]  ;;  %vm119_vm0 = vcmask 1042432   ;;  %vm57_vm1 = vcmask 23552  }
   0xf   :  { %80 = vst [vmem:[#allocation1 + $0x10] ss:$2 sm:$0xff] %v60_v2  ;;  %v65_v5 = vld [vmem:[%s2611_s0 + $0x30] sm:$0x77]  ;;  %v64_v10 = vld [vmem:[%s2611_s0 + $0x28] sm:$0x77] }
  0x10   :  { %88 = vst [vmem:[#allocation1 + $0x30] ss:$2 sm:$0xff] %v62_v3  ;;  %v66_v16 = vld [vmem:[%s2611_s0 + $0x38] sm:$0x77]  ;;  %v2367_v48 = vmov 0.0   ;;  %v2368_v49 = vmov 2  }
  0x11   :  { %58 = vst.msk [vmem:[#allocation2] sm:$0xff] %vm57_vm1, %v2367_v48  ;;  %2274 = vset.pattern.permute.xlu1 %v2368_v49  ;;  %v2369_v50 = vmov 1   ;;  %v2370_v51 = vmov 0   ;;  %v2452_v54 = vand.u32 127, %v168_v52  ;;  %vm178_vm2 = vcmask 1041409   ;;  %s2371_s6 = smov 127  }
  0x12   :  { %2273 = vset.pattern.permute.xlu0 %v2369_v50  ;;  %2272 = vset.pattern.permute.xlu2 %v2370_v51  ;;  %vm180_vm3 = vcmask 1042434   ;;  %v1597_v56 = vld [vmem:[#allocation3 + $0x70] sm:$0xf]  ;;  %v2130_v57 = vld [vmem:[#allocation3 + $0x74] sm:$0xf0]  ;;  %vm182_vm4 = vcmask 1043459  }
  0x13   :  { %v1661_v58 = vld [vmem:[#allocation3 + $0xf0] sm:$0xf]  ;;  %v1598_v59 = vor.u32 %v2130_v57, %v1597_v56  ;;  %v2146_v60 = vld [vmem:[#allocation3 + $0xf4] sm:$0xf0]  ;;  %v1589_v3 = vld [vmem:[#allocation3 + $0x60] sm:$0xf] }
  0x14   :  { %v77_v6 = vld.sshfl [vmem:[#allocation1] sm:$0xff pattern:$0x75316420]  ;;  %v78_v7 = vld.sshfl [vmem:[#allocation1 + $0x8] sm:$0xff pattern:$0x75316420]  ;;  %v1662_v63 = vor.u32 %v2146_v60, %v1661_v58 }
  0x15   :  { %v120_v8 = vsel %vm119_vm0, %v77_v6, 0.0  ;;  %v121_v9 = vsel %vm119_vm0, %v78_v7, 0.0  ;;  %91 = vst [vmem:[#allocation1] ss:$2 sm:$0xff] %v63_v4  ;;  %v1725_v61 = vld [vmem:[#allocation3 + $0x170] sm:$0xf]  ;;  %1119 = vmatpush.bf16.msra.mxu0 %v1598_v59 }
  0x16   :  { %v122_v11 = vadd.f32 %v121_v9, %v120_v8  ;;  %v85_v12 = vld.sshfl [vmem:[#allocation1 + $0x20] sm:$0xff pattern:$0x75316420]  ;;  %v86_v13 = vld.sshfl [vmem:[#allocation1 + $0x28] sm:$0xff pattern:$0x75316420]  ;;  %1132 = vmatpush.bf16.msra.mxu1 %v1662_v63 }
  0x17   :  { %v130_v14 = vsel %vm119_vm0, %v85_v12, 0.0  ;;  %v131_v15 = vsel %vm119_vm0, %v86_v13, 0.0  ;;  %97 = vst [vmem:[#allocation1 + $0x20] ss:$2 sm:$0xff] %v65_v5  ;;  %v2162_v62 = vld [vmem:[#allocation3 + $0x174] sm:$0xf0] }
  0x18   :  { %123 = vadd.xlane.f32.xlu0 %v122_v11  ;;  %v132_v17 = vadd.f32 %v131_v15, %v130_v14  ;;  %v81_v18 = vld.sshfl [vmem:[#allocation1 + $0x10] sm:$0xff pattern:$0x75316420]  ;;  %v82_v19 = vld.sshfl [vmem:[#allocation1 + $0x18] sm:$0xff pattern:$0x75316420]  ;;  %v1726_v0 = vor.u32 %v2162_v62, %v1725_v61 }
  0x19   :  { %94 = vst [vmem:[#allocation1 + $0x10] ss:$2 sm:$0xff] %v64_v10  ;;  %v125_v20 = vsel %vm119_vm0, %v81_v18, 0.0  ;;  %v126_v21 = vsel %vm119_vm0, %v82_v19, 0.0  ;;  %v1789_v1 = vld [vmem:[#allocation3 + $0x1f0] sm:$0xf] }
  0x1a   :  { %133 = vadd.xlane.f32.xlu1 %v132_v17  ;;  %v89_v22 = vld.sshfl [vmem:[#allocation1 + $0x30] sm:$0xff pattern:$0x75316420]  ;;  %v90_v23 = vld.sshfl [vmem:[#allocation1 + $0x38] sm:$0xff pattern:$0x75316420]  ;;  %v127_v26 = vadd.f32 %v126_v21, %v125_v20  ;;  %1145 = vmatpush.bf16.msra.mxu2 %v1726_v0 }
  0x1b   :  { %100 = vst [vmem:[#allocation1 + $0x30] ss:$2 sm:$0xff] %v66_v16  ;;  %v135_v24 = vsel %vm119_vm0, %v89_v22, 0.0  ;;  %v136_v25 = vsel %vm119_vm0, %v90_v23, 0.0  ;;  %v2178_v2 = vld [vmem:[#allocation3 + $0x1f4] sm:$0xf0] }
  0x1c   :  { %v92_v27 = vld.sshfl [vmem:[#allocation1] sm:$0xff pattern:$0x75316420]  ;;  %v93_v28 = vld.sshfl [vmem:[#allocation1 + $0x8] sm:$0xff pattern:$0x75316420]  ;;  %v137_v32 = vadd.f32 %v136_v25, %v135_v24  ;;  %v1790_v4 = vor.u32 %v2178_v2, %v1789_v1 }
  0x1d   :  { %v140_v29 = vsel %vm119_vm0, %v92_v27, 0.0  ;;  %v141_v30 = vsel %vm119_vm0, %v93_v28, 0.0  ;;  %v2128_v5 = vld [vmem:[#allocation3 + $0x64] sm:$0xf0]  ;;  %v1653_v6 = vld [vmem:[#allocation3 + $0xe0] sm:$0xf] }
  0x1e   :  { %v142_v31 = vadd.f32 %v141_v30, %v140_v29  ;;  %v98_v33 = vld.sshfl [vmem:[#allocation1 + $0x20] sm:$0xff pattern:$0x75316420]  ;;  %v99_v34 = vld.sshfl [vmem:[#allocation1 + $0x28] sm:$0xff pattern:$0x75316420]  ;;  %v1590_v8 = vor.u32 %v2128_v5, %v1589_v3  ;;  %1158 = vmatpush.bf16.msra.mxu3 %v1790_v4 }
  0x1f   :  { %v150_v39 = vsel %vm119_vm0, %v98_v33, 0.0  ;;  %v151_v40 = vsel %vm119_vm0, %v99_v34, 0.0  ;;  %v2144_v7 = vld [vmem:[#allocation3 + $0xe4] sm:$0xf0]  ;;  %v1717_v10 = vld [vmem:[#allocation3 + $0x160] sm:$0xf] }
  0x20   :  { %128 = vadd.xlane.f32.xlu0 %v127_v26  ;;  %143 = vadd.xlane.f32.xlu2 %v142_v31  ;;  %v95_v35 = vld.sshfl [vmem:[#allocation1 + $0x10] sm:$0xff pattern:$0x75316420]  ;;  %v96_v36 = vld.sshfl [vmem:[#allocation1 + $0x18] sm:$0xff pattern:$0x75316420]  ;;  %v152_v46 = vadd.f32 %v151_v40, %v150_v39  ;;  %v1654_v9 = vor.u32 %v2144_v7, %v1653_v6 }
  0x21   :  { %v145_v37 = vsel %vm119_vm0, %v95_v35, 0.0  ;;  %v146_v38 = vsel %vm119_vm0, %v96_v36, 0.0  ;;  %v2160_v11 = vld [vmem:[#allocation3 + $0x164] sm:$0xf0]  ;;  %v1781_v12 = vld [vmem:[#allocation3 + $0x1e0] sm:$0xf]  ;;  %1120 = vmatpush.bf16.msra.mxu0 %v1590_v8 }
  0x22   :  { %138 = vadd.xlane.f32.xlu1 %v137_v32  ;;  %v101_v41 = vld.sshfl [vmem:[#allocation1 + $0x30] sm:$0xff pattern:$0x75316420]  ;;  %v102_v42 = vld.sshfl [vmem:[#allocation1 + $0x38] sm:$0xff pattern:$0x75316420]  ;;  %v147_v45 = vadd.f32 %v146_v38, %v145_v37  ;;  %v1718_v15 = vor.u32 %v2160_v11, %v1717_v10  ;;  %1133 = vmatpush.bf16.msra.mxu1 %v1654_v9 }
  0x23   :  { %v155_v43 = vsel %vm119_vm0, %v101_v41, 0.0  ;;  %v156_v44 = vsel %vm119_vm0, %v102_v42, 0.0  ;;  %v2176_v16 = vld [vmem:[#allocation3 + $0x1e4] sm:$0xf0]  ;;  %v1581_v17 = vld [vmem:[#allocation3 + $0x50] sm:$0xf] }
  0x24   :  { %v157_v47 = vadd.f32 %v156_v44, %v155_v43  ;;  %v2126_v18 = vld [vmem:[#allocation3 + $0x54] sm:$0xf0]  ;;  %v1782_v21 = vor.u32 %v2176_v16, %v1781_v12  ;;  %v1645_v22 = vld [vmem:[#allocation3 + $0xd0] sm:$0xf]  ;;  %1146 = vmatpush.bf16.msra.mxu2 %v1718_v15  ;;  %v1573_v35 = vld [vmem:[#allocation3 + $0x40] sm:$0xf] }
  0x25   :  { %v2142_v23 = vld [vmem:[#allocation3 + $0xd4] sm:$0xf0]  ;;  %v1709_v24 = vld [vmem:[#allocation3 + $0x150] sm:$0xf]  ;;  %v1582_v27 = vor.u32 %v2126_v18, %v1581_v17  ;;  %v2124_v36 = vld [vmem:[#allocation3 + $0x44] sm:$0xf0] }
  0x26   :  { %v1646_v28 = vor.u32 %v2142_v23, %v1645_v22  ;;  %v2158_v29 = vld [vmem:[#allocation3 + $0x154] sm:$0xf0]  ;;  %v1773_v30 = vld [vmem:[#allocation3 + $0x1d0] sm:$0xf]  ;;  %v1637_v37 = vld [vmem:[#allocation3 + $0xc0] sm:$0xf]  ;;  %1159 = vmatpush.bf16.msra.mxu3 %v1782_v21 }
  0x27   :  { %v2174_v31 = vld [vmem:[#allocation3 + $0x1d4] sm:$0xf0]  ;;  %v1710_v34 = vor.u32 %v2158_v29, %v1709_v24  ;;  %v2140_v40 = vld [vmem:[#allocation3 + $0xc4] sm:$0xf0]  ;;  %v1701_v41 = vld [vmem:[#allocation3 + $0x140] sm:$0xf]  ;;  %1121 = vmatpush.bf16.msra.mxu0 %v1582_v27 }
  0x28   :  { %148 = vadd.xlane.f32.xlu2 %v147_v45  ;;  %153 = vadd.xlane.f32.xlu0 %v152_v46  ;;  %v1774_v39 = vor.u32 %v2174_v31, %v1773_v30  ;;  %v2156_v42 = vld [vmem:[#allocation3 + $0x144] sm:$0xf0]  ;;  %v1765_v43 = vld [vmem:[#allocation3 + $0x1c0] sm:$0xf]  ;;  %vm184_vm5 = vcmask 1044484   ;;  %v1574_v45 = vor.u32 %v2124_v36, %v1573_v35  ;;  %v1638_v48 = vor.u32 %v2140_v40, %v1637_v37  ;;  %v67_v3 = vld [vmem:[#allocation2] sm:$0xff] }
  0x29   :  { %v2172_v44 = vld [vmem:[#allocation3 + $0x1c4] sm:$0xf0]  ;;  %v1565_v46 = vld [vmem:[#allocation3 + $0x30] sm:$0xf]  ;;  %1134 = vmatpush.bf16.msra.mxu1 %v1646_v28  ;;  %1147 = vmatpush.bf16.msra.mxu2 %v1710_v34  ;;  %v1702_v49 = vor.u32 %v2156_v42, %v1701_v41  ;;  %v2122_v50 = vld [vmem:[#allocation3 + $0x34] sm:$0xf0] }
  0x2a   :  { %158 = vadd.xlane.f32.xlu1 %v157_v47  ;;  %v1629_v52 = vld [vmem:[#allocation3 + $0xb0] sm:$0xf]  ;;  %vm186_vm6 = vcmask 1045509   ;;  %1160 = vmatpush.bf16.msra.mxu3 %v1774_v39  ;;  %v1766_v58 = vor.u32 %v2172_v44, %v1765_v43  ;;  %v2154_v60 = vld [vmem:[#allocation3 + $0x134] sm:$0xf0]  ;;  %vm188_vm7 = vcmask 1046534   ;;  %v1566_v4 = vor.u32 %v2122_v50, %v1565_v46 }
  0x2b   :  { %v1693_v59 = vld [vmem:[#allocation3 + $0x130] sm:$0xf]  ;;  %v2170_v0 = vld [vmem:[#allocation3 + $0x1b4] sm:$0xf0]  ;;  %vm190_vm8 = vcmask 1047559   ;;  %1122 = vmatpush.bf16.msra.mxu0 %v1574_v45  ;;  %s2372_s2 = smov 1  }
  0x2c   :  { %v1757_v63 = vld [vmem:[#allocation3 + $0x1b0] sm:$0xf]  ;;  %v1694_v8 = vor.u32 %v2154_v60, %v1693_v59  ;;  %v1557_v9 = vld [vmem:[#allocation3 + $0x20] sm:$0xf]  ;;  %v2120_v10 = vld [vmem:[#allocation3 + $0x24] sm:$0xf0] }
  0x2d   :  { %1135 = vmatpush.bf16.msra.mxu1 %v1638_v48  ;;  %1148 = vmatpush.bf16.msra.mxu2 %v1702_v49  ;;  %v1621_v11 = vld [vmem:[#allocation3 + $0xa0] sm:$0xf]  ;;  %v2152_v16 = vld [vmem:[#allocation3 + $0x124] sm:$0xf0]  ;;  %v1549_v21 = vld [vmem:[#allocation3 + $0x10] sm:$0xf] }
  0x2e   :  { %1161 = vmatpush.bf16.msra.mxu3 %v1766_v58  ;;  %v1685_v15 = vld [vmem:[#allocation3 + $0x120] sm:$0xf]  ;;  %v2118_v24 = vld [vmem:[#allocation3 + $0x14] sm:$0xf0]  ;;  %v1677_v28 = vld [vmem:[#allocation3 + $0x110] sm:$0xf] }
  0x2f   :  { %v1749_v18 = vld [vmem:[#allocation3 + $0x1a0] sm:$0xf]  ;;  %1123 = vmatpush.bf16.msra.mxu0 %v1566_v4  ;;  %v1686_v23 = vor.u32 %v2152_v16, %v1685_v15  ;;  %v2150_v29 = vld [vmem:[#allocation3 + $0x114] sm:$0xf0]  ;;  %v1741_v30 = vld [vmem:[#allocation3 + $0x190] sm:$0xf] }
  0x30   :  { %v2166_v31 = vld [vmem:[#allocation3 + $0x194] sm:$0xf0]  ;;  %v1678_v34 = vor.u32 %v2150_v29, %v1677_v28  ;;  %v2116_v39 = vld [vmem:[#allocation3 + $0x4] sm:$0xf0]  ;;  %v1605_v40 = vld [vmem:[#allocation3 + $0x80] sm:$0xf] }
  0x31   :  { %1149 = vmatpush.bf16.msra.mxu2 %v1694_v8  ;;  %v1742_v35 = vor.u32 %v2166_v31, %v1741_v30  ;;  %v2132_v42 = vld [vmem:[#allocation3 + $0x84] sm:$0xf0]  ;;  %v1669_v43 = vld [vmem:[#allocation3 + $0x100] sm:$0xf]  ;;  %v1853_v49 = vld [vmem:[#allocation3 + $0x270] sm:$0xf] }
  0x32   :  { %v2148_v44 = vld [vmem:[#allocation3 + $0x104] sm:$0xf0]  ;;  %v1606_v45 = vor.u32 %v2132_v42, %v1605_v40  ;;  %v2226_v58 = vld [vmem:[#allocation3 + $0x374] sm:$0xf0]  ;;  %v2045_v59 = vld [vmem:[#allocation3 + $0x3f0] sm:$0xf] }
  0x33   :  { %v1670_v46 = vor.u32 %v2148_v44, %v1669_v43  ;;  %v2164_v48 = vld [vmem:[#allocation3 + $0x184] sm:$0xf0]  ;;  %v1973_v4 = vld [vmem:[#allocation3 + $0x360] sm:$0xf]  ;;  %v1965_v15 = vld [vmem:[#allocation3 + $0x350] sm:$0xf] }
  0x34   :  { %v2240_v8 = vld [vmem:[#allocation3 + $0x3e4] sm:$0xf0]  ;;  %v2222_v16 = vld [vmem:[#allocation3 + $0x354] sm:$0xf0]  ;;  %v2021_v28 = vld [vmem:[#allocation3 + $0x3c0] sm:$0xf] }
  0x35   :  { %1150 = vmatpush.bf16.msra.mxu2 %v1686_v23  ;;  %v1893_v23 = vld [vmem:[#allocation3 + $0x2c0] sm:$0xf]  ;;  %v2236_v29 = vld [vmem:[#allocation3 + $0x3c4] sm:$0xf0]  ;;  %v2013_v40 = vld [vmem:[#allocation3 + $0x3b0] sm:$0xf] }
  0x36   :  { %v1813_v44 = vld [vmem:[#allocation3 + $0x220] sm:$0xf]  ;;  %s1525_s9 = sshll.u32 %s2616_s5, 4  ;;  %s1526_s9 = int_to_ptr.hbm [resolvable:$true] %s1525_s9 }
  0x39   :  { %1151 = vmatpush.bf16.msra.mxu2 %v1678_v34  ;;  %v2186_v34 = vld [vmem:[#allocation3 + $0x234] sm:$0xf0] }
  0x3d   :  { %1152 = vmatpush.bf16.msra.mxu2 %v1670_v46  ;;  %v2184_v46 = vld [vmem:[#allocation3 + $0x224] sm:$0xf0] }
  0x8b   :  { %v124_v53 = vpop.xlane.xlu0 %123 }
  0x8c   :  { %v170_v19 = vperm.slane %v124_v53, %v2452_v54  ;;  %v2138_v53 = vld [vmem:[#allocation3 + $0xb4] sm:$0xf0] }
  0x8d   :  { %v134_v55 = vpop.xlane.xlu1 %133  ;;  %v1630_v5 = vor.u32 %v2138_v53, %v1629_v52  ;;  %v2194_v52 = vld [vmem:[#allocation3 + $0x274] sm:$0xf0]  ;;  %v1917_v53 = vld [vmem:[#allocation3 + $0x2f0] sm:$0xf] }
  0x8e   :  { %v172_v25 = vperm.slane %v134_v55, %v2452_v54 }
  0x8f   :  { %1136 = vmatpush.bf16.msra.mxu1 %v1630_v5 }
  0x93   :  { %v129_v13 = vpop.xlane.xlu0 %128  ;;  %v2454_v14 = vpop.xlane.xlu2 %143 }
  0x94   :  { %v171_v20 = vperm.slane %v129_v13, %v2452_v54  ;;  %v174_v55 = vperm.slane %v2454_v14, %v2452_v54  ;;  %v1758_v13 = vor.u32 %v2170_v0, %v1757_v63  ;;  %v2136_v14 = vld [vmem:[#allocation3 + $0xa4] sm:$0xf0] }
  0x95   :  { %v139_v26 = vpop.xlane.xlu1 %138  ;;  %v1622_v22 = vor.u32 %v2136_v14, %v1621_v11  ;;  %v2192_v63 = vld [vmem:[#allocation3 + $0x264] sm:$0xf0]  ;;  %v1837_v11 = vld [vmem:[#allocation3 + $0x250] sm:$0xf]  ;;  %v2206_v14 = vld [vmem:[#allocation3 + $0x2d4] sm:$0xf0] }
  0x96   :  { %v179_v32 = vsel %vm178_vm2, %v171_v20, %v170_v19  ;;  %v173_v33 = vperm.slane %v139_v26, %v2452_v54  ;;  %v2168_v19 = vld [vmem:[#allocation3 + $0x1a4] sm:$0xf0]  ;;  %v2134_v26 = vld [vmem:[#allocation3 + $0x94] sm:$0xf0]  ;;  %1162 = vmatpush.bf16.msra.mxu3 %v1758_v13  ;;  %v1901_v13 = vld [vmem:[#allocation3 + $0x2d0] sm:$0xf] }
  0x97   :  { %v181_v38 = vsel %vm180_vm3, %v172_v25, %v179_v32  ;;  %v1613_v25 = vld [vmem:[#allocation3 + $0x90] sm:$0xf]  ;;  %v1750_v27 = vor.u32 %v2168_v19, %v1749_v18  ;;  %v1550_v32 = vor.u32 %v2118_v24, %v1549_v21  ;;  %1137 = vmatpush.bf16.msra.mxu1 %v1622_v22  ;;  %v1902_v18 = vor.u32 %v2206_v14, %v1901_v13  ;;  %v2188_v22 = vld [vmem:[#allocation3 + $0x244] sm:$0xf0]  ;;  %v1989_v13 = vld [vmem:[#allocation3 + $0x380] sm:$0xf] }
  0x98   :  { %v183_v47 = vsel %vm182_vm4, %v173_v33, %v181_v38  ;;  %v1614_v33 = vor.u32 %v2134_v26, %v1613_v25  ;;  %v1541_v38 = vld [vmem:[#allocation3] sm:$0xf]  ;;  %v2029_v19 = vld [vmem:[#allocation3 + $0x3d0] sm:$0xf]  ;;  %v1966_v21 = vor.u32 %v2222_v16, %v1965_v15  ;;  %v2204_v24 = vld [vmem:[#allocation3 + $0x2c4] sm:$0xf0] }
  0x99   :  { %v185_v1 = vsel %vm184_vm5, %v174_v55, %v183_v47  ;;  %v1542_v41 = vor.u32 %v2116_v39, %v1541_v38  ;;  %v1733_v47 = vld [vmem:[#allocation3 + $0x180] sm:$0xf]  ;;  %v2210_v55 = vld [vmem:[#allocation3 + $0x2f4] sm:$0xf0]  ;;  %v1894_v31 = vor.u32 %v2204_v24, %v1893_v23  ;;  %v1949_v38 = vld [vmem:[#allocation3 + $0x330] sm:$0xf] }
  0x9a   :  { %1163 = vmatpush.bf16.msra.mxu3 %v1750_v27  ;;  %v1734_v50 = vor.u32 %v2164_v48, %v1733_v47  ;;  %v1957_v26 = vld [vmem:[#allocation3 + $0x340] sm:$0xf]  ;;  %v2220_v27 = vld [vmem:[#allocation3 + $0x344] sm:$0xf0]  ;;  %v2218_v39 = vld [vmem:[#allocation3 + $0x334] sm:$0xf0] }
  0x9b   :  { %v149_v56 = vpop.xlane.xlu2 %148  ;;  %v154_v57 = vpop.xlane.xlu0 %153  ;;  %1138 = vmatpush.bf16.msra.mxu1 %v1614_v33  ;;  %v1958_v33 = vor.u32 %v2220_v27, %v1957_v26  ;;  %v1877_v47 = vld [vmem:[#allocation3 + $0x2a0] sm:$0xf]  ;;  %v2200_v48 = vld [vmem:[#allocation3 + $0x2a4] sm:$0xf0] }
  0x9c   :  { %v175_v61 = vperm.slane %v149_v56, %v2452_v54  ;;  %v176_v62 = vperm.slane %v154_v57, %v2452_v54  ;;  %v1918_v56 = vor.u32 %v2210_v55, %v1917_v53  ;;  %v1981_v57 = vld [vmem:[#allocation3 + $0x370] sm:$0xf]  ;;  %v2005_v53 = vld [vmem:[#allocation3 + $0x3a0] sm:$0xf]  ;;  %v2232_v55 = vld [vmem:[#allocation3 + $0x3a4] sm:$0xf0] }
  0x9d   :  { %v159_v2 = vpop.xlane.xlu1 %158  ;;  %v1982_v60 = vor.u32 %v2226_v58, %v1981_v57  ;;  %v1805_v58 = vld [vmem:[#allocation3 + $0x210] sm:$0xf]  ;;  %v2228_v14 = vld [vmem:[#allocation3 + $0x384] sm:$0xf0] }
  0x9e   :  { %v187_v6 = vsel %vm186_vm6, %v175_v61, %v185_v1  ;;  %v177_v7 = vperm.slane %v159_v2, %v2452_v54  ;;  %v1558_v54 = vor.u32 %v2120_v10, %v1557_v9  ;;  %1164 = vmatpush.bf16.msra.mxu3 %v1742_v35  ;;  %v2242_v61 = vld [vmem:[#allocation3 + $0x3f4] sm:$0xf0]  ;;  %v1909_v2 = vld [vmem:[#allocation3 + $0x2e0] sm:$0xf]  ;;  %v1885_v35 = vld [vmem:[#allocation3 + $0x2b0] sm:$0xf] }
  0x9f   :  { %v189_v12 = vsel %vm188_vm7, %v176_v62, %v187_v6  ;;  %1139 = vmatpush.bf16.msra.mxu1 %v1606_v45  ;;  %v1845_v62 = vld [vmem:[#allocation3 + $0x260] sm:$0xf]  ;;  %v2046_v0 = vor.u32 %v2242_v61, %v2045_v59  ;;  %1197 = vmatpush.bf16.msrb.mxu2 %v1982_v60  ;;  %v2224_v6 = vld [vmem:[#allocation3 + $0x364] sm:$0xf0]  ;;  %v1950_v45 = vor.u32 %v2218_v39, %v1949_v38  ;;  %v2182_v59 = vld [vmem:[#allocation3 + $0x214] sm:$0xf0] }
  0xa0   :  { %v191_v17 = vsel %vm190_vm8, %v177_v7, %v189_v12  ;;  %1124 = vmatpush.bf16.msra.mxu0 %v1558_v54  ;;  %v1846_v1 = vor.u32 %v2192_v63, %v1845_v62  ;;  %v2037_v7 = vld [vmem:[#allocation3 + $0x3e0] sm:$0xf]  ;;  %v1974_v9 = vor.u32 %v2224_v6, %v1973_v4  ;;  %v2190_v12 = vld [vmem:[#allocation3 + $0x254] sm:$0xf0]  ;;  %v1869_v60 = vld [vmem:[#allocation3 + $0x290] sm:$0xf]  ;;  %v2006_v61 = vor.u32 %v2232_v55, %v2005_v53 }
  0xa1   :  { %v193_v20 = vadd.f32 %v191_v17, %v67_v3  ;;  %v2208_v3 = vld [vmem:[#allocation3 + $0x2e4] sm:$0xf0]  ;;  %v2038_v10 = vor.u32 %v2240_v8, %v2037_v7  ;;  %v1838_v17 = vor.u32 %v2190_v12, %v1837_v11  ;;  %v1829_v54 = vld [vmem:[#allocation3 + $0x240] sm:$0xf]  ;;  %v2198_v62 = vld [vmem:[#allocation3 + $0x294] sm:$0xf0] }
  0xa2   :  { %1165 = vmatpush.bf16.msra.mxu3 %v1734_v50  ;;  %v1910_v5 = vor.u32 %v2208_v3, %v1909_v2  ;;  %v1830_v30 = vor.u32 %v2188_v22, %v1829_v54  ;;  %v1941_v50 = vld [vmem:[#allocation3 + $0x320] sm:$0xf]  ;;  %v1933_v63 = vld [vmem:[#allocation3 + $0x310] sm:$0xf]  ;;  %v2230_v2 = vld [vmem:[#allocation3 + $0x394] sm:$0xf0]  ;;  %v1806_v3 = vor.u32 %v2182_v59, %v1805_v58  ;;  %v1870_v4 = vor.u32 %v2198_v62, %v1869_v60 }
  0xa3   :  { %195 = vst.msk [vmem:[#allocation2] sm:$0xff] %vm57_vm1, %v193_v20  ;;  %1184 = vmatpush.bf16.msrb.mxu1 %v1918_v56  ;;  %v2238_v20 = vld [vmem:[#allocation3 + $0x3d4] sm:$0xf0]  ;;  %1198 = vmatpush.bf16.msrb.mxu2 %v1974_v9  ;;  %v1878_v56 = vor.u32 %v2200_v48, %v1877_v47  ;;  %v2180_v7 = vld [vmem:[#allocation3 + $0x204] sm:$0xf0] }
  0xa4   :  { %1125 = vmatpush.bf16.msra.mxu0 %v1550_v32  ;;  %v2030_v25 = vor.u32 %v2238_v20, %v2029_v19  ;;  %v1821_v32 = vld [vmem:[#allocation3 + $0x230] sm:$0xf]  ;;  %v1861_v8 = vld [vmem:[#allocation3 + $0x280] sm:$0xf]  ;;  %v2196_v9 = vld [vmem:[#allocation3 + $0x284] sm:$0xf0] }
  0xa5   :  { %v1822_v42 = vor.u32 %v2186_v34, %v1821_v32  ;;  %v1925_v11 = vld [vmem:[#allocation3 + $0x300] sm:$0xf]  ;;  %v2212_v12 = vld [vmem:[#allocation3 + $0x304] sm:$0xf0]  ;;  %v1862_v16 = vor.u32 %v2196_v9, %v1861_v8  ;;  %v2512_v39 = vld [vmem:[#allocation3 + $0x74] sm:$0xf] }
  0xa6   :  { %1210 = vmatpush.bf16.msrb.mxu3 %v2046_v0  ;;  %v2214_v0 = vld [vmem:[#allocation3 + $0x314] sm:$0xf0]  ;;  %v2145_v60 = vld [vmem:[#allocation3 + $0xf4] sm:$0xf]  ;;  %v1791_v9 = vld [vmem:[#allocation3 + $0x1f8] sm:$0xf0] }
  0xa7   :  { %1185 = vmatpush.bf16.msrb.mxu1 %v1910_v5  ;;  %1199 = vmatpush.bf16.msrb.mxu2 %v1966_v21  ;;  %v1797_v5 = vld [vmem:[#allocation3 + $0x200] sm:$0xf]  ;;  %v1934_v6 = vor.u32 %v2214_v0, %v1933_v63  ;;  %v2177_v8 = vld [vmem:[#allocation3 + $0x1f4] sm:$0xf] }
  0xa8   :  { %1126 = vmatpush.bf16.msra.mxu0 %v1542_v41  ;;  %v2234_v41 = vld [vmem:[#allocation3 + $0x3b4] sm:$0xf0]  ;;  %v1798_v15 = vor.u32 %v2180_v7, %v1797_v5 }
  0xa9   :  { %v2477_v19 = vld [vmem:[%s2612_s1] ss:$4 sm:$0xff]  ;;  %v2491_v23 = vld [vmem:[%s2612_s1 + $0x1] ss:$4 sm:$0xff] }
  0xaa   :  { %v199_v36 = vld [vmem:[#allocation2] sm:$0xff]  ;;  %1211 = vmatpush.bf16.msrb.mxu3 %v2038_v10  ;;  %v209_v54 = vperm.slane %v2477_v19, 0  ;;  %v210_v21 = vperm.slane %v2477_v19, 1  ;;  %v211_v24 = vperm.slane %v2477_v19, 2  ;;  %v266_v38 = vperm.slane %v2491_v23, 1 }
  0xab   :  { %v200_v37 = vmul.f32 0.00390625, %v199_v36  ;;  %1186 = vmatpush.bf16.msrb.mxu1 %v1902_v18  ;;  %v2202_v36 = vld [vmem:[#allocation3 + $0x2b4] sm:$0xf0]  ;;  %1200 = vmatpush.bf16.msrb.mxu2 %v1958_v33  ;;  %v1990_v18 = vor.u32 %v2228_v14, %v1989_v13  ;;  %v214_v33 = vperm.slane %v2477_v19, 5  ;;  %v215_v47 = vperm.slane %v2477_v19, 6 }
  0xac   :  { %v1886_v43 = vor.u32 %v2202_v36, %v1885_v35  ;;  %v2482_v20 = vld [vmem:[%s2615_s4] ss:$4 sm:$0xff]  ;;  %v265_v36 = vperm.slane %v2491_v23, 0 }
  0xad   :  { %300 = vperm.xlu1 %2274, %v200_v37   ;;  %261 = vperm.xlu0 %2273, %v200_v37   ;;  %v234_v26 = vperm.slane %v2482_v20, 0  ;;  %v235_v27 = vperm.slane %v2482_v20, 1  ;;  %v238_v32 = vperm.slane %v2482_v20, 4  ;;  %v239_v34 = vperm.slane %v2482_v20, 5 }
  0xae   :  { %205 = vperm.xlu2 %2272, %v200_v37   ;;  %1212 = vmatpush.bf16.msrb.mxu3 %v2030_v25  ;;  %v2022_v37 = vor.u32 %v2236_v29, %v2021_v28  ;;  %v212_v25 = vperm.slane %v2477_v19, 3  ;;  %v236_v28 = vperm.slane %v2482_v20, 2  ;;  %v237_v29 = vperm.slane %v2482_v20, 3 }
  0xaf   :  { %1187 = vmatpush.bf16.msrb.mxu1 %v1894_v31  ;;  %1201 = vmatpush.bf16.msrb.mxu2 %v1950_v45  ;;  %v213_v31 = vperm.slane %v2477_v19, 4  ;;  %v240_v48 = vperm.slane %v2482_v20, 6 }
  0xb2   :  { %1213 = vmatpush.bf16.msrb.mxu3 %v2022_v37 }
  0xb3   :  { %1188 = vmatpush.bf16.msrb.mxu1 %v1886_v43 }
  0xb5   :  { %2275 = vset.pattern.permute.xlu0 %v2370_v51  ;;  %v1854_v51 = vor.u32 %v2194_v52, %v1853_v49  ;;  %v2014_v49 = vor.u32 %v2234_v41, %v2013_v40  ;;  %v2216_v52 = vld [vmem:[#allocation3 + $0x324] sm:$0xf0]  ;;  %v2514_v40 = vld [vmem:[#allocation3 + $0x78] sm:$0xf0] }
  0xb6   :  { %v1942_v57 = vor.u32 %v2216_v52, %v1941_v50  ;;  %v1602_v55 = vor.u32 %v2512_v39, %v2514_v40  ;;  %v2159_v40 = vld [vmem:[#allocation3 + $0x164] sm:$0xf] }
  0xb7   :  { %1171 = vmatpush.bf16.msrb.mxu0 %v1854_v51  ;;  %v1814_v51 = vor.u32 %v2184_v46, %v1813_v44  ;;  %1214 = vmatpush.bf16.msrb.mxu3 %v2014_v49  ;;  %v268_v44 = vperm.slane %v2491_v23, 3 }
  0xb8   :  { %1189 = vmatpush.bf16.msrb.mxu1 %v1878_v56  ;;  %1202 = vmatpush.bf16.msrb.mxu2 %v1942_v57 }
  0xbb   :  { %1172 = vmatpush.bf16.msrb.mxu0 %v1846_v1  ;;  %v1997_v1 = vld [vmem:[#allocation3 + $0x390] sm:$0xf]  ;;  %1215 = vmatpush.bf16.msrb.mxu3 %v2006_v61 }
  0xbc   :  { %v1998_v10 = vor.u32 %v2230_v2, %v1997_v1  ;;  %1190 = vmatpush.bf16.msrb.mxu1 %v1870_v4  ;;  %1203 = vmatpush.bf16.msrb.mxu2 %v1934_v6  ;;  %v1663_v1 = vld [vmem:[#allocation3 + $0xf8] sm:$0xf0]  ;;  %v2161_v2 = vld [vmem:[#allocation3 + $0x174] sm:$0xf] }
  0xbf   :  { %1173 = vmatpush.bf16.msrb.mxu0 %v1838_v17  ;;  %v1926_v17 = vor.u32 %v2212_v12, %v1925_v11  ;;  %1216 = vmatpush.bf16.msrb.mxu3 %v1998_v10 }
  0xc0   :  { %1191 = vmatpush.bf16.msrb.mxu1 %v1862_v16  ;;  %v1666_v16 = vor.u32 %v2145_v60, %v1663_v1  ;;  %v1775_v1 = vld [vmem:[#allocation3 + $0x1d8] sm:$0xf0] }
  0xc1   :  { %1204 = vmatpush.bf16.msrb.mxu2 %v1926_v17 }
  0xc3   :  { %1174 = vmatpush.bf16.msrb.mxu0 %v1830_v30  ;;  %1217 = vmatpush.bf16.msrb.mxu3 %v1990_v18  ;;  %v2502_v30 = vld [vmem:[%s2612_s1 + $0x2] ss:$4 sm:$0xff] }
  0xc4   :  { %v304_v45 = vperm.slane %v2502_v30, 0  ;;  %v305_v46 = vperm.slane %v2502_v30, 1  ;;  %v306_v52 = vperm.slane %v2502_v30, 2  ;;  %v307_v53 = vperm.slane %v2502_v30, 3 }
  0xc7   :  { %1175 = vmatpush.bf16.msrb.mxu0 %v1822_v42  ;;  %v267_v42 = vperm.slane %v2491_v23, 2 }
  0xcb   :  { %1176 = vmatpush.bf16.msrb.mxu0 %v1814_v51  ;;  %v216_v51 = vperm.slane %v2477_v19, 7 }
  0xcf   :  { %1177 = vmatpush.bf16.msrb.mxu0 %v1806_v3  ;;  %v1727_v3 = vld [vmem:[#allocation3 + $0x178] sm:$0xf0] }
  0xd0   :  { %v1730_v17 = vor.u32 %v2161_v2, %v1727_v3  ;;  %v309_v3 = vperm.slane %v2502_v30, 5 }
  0xd3   :  { %1178 = vmatpush.bf16.msrb.mxu0 %v1798_v15 }
 0x108   :  { %v2486_v22 = vpop.permute.xlu2 %205 }
 0x109   :  { %v225_v35 = vmul.f32 %v209_v54, %v2486_v22  ;;  %v226_v37 = vmul.f32 %v210_v21, %v2486_v22  ;;  %v227_v41 = vmul.f32 %v211_v24, %v2486_v22  ;;  %v228_v43 = vmul.f32 %v212_v25, %v2486_v22  ;;  %v2127_v24 = vld [vmem:[#allocation3 + $0x64] sm:$0xf]  ;;  %v1591_v25 = vld [vmem:[#allocation3 + $0x68] sm:$0xf0] }
 0x10a   :  { %v1794_v21 = vor.u32 %v2177_v8, %v1791_v9  ;;  %v2123_v8 = vld [vmem:[#allocation3 + $0x44] sm:$0xf]  ;;  %v310_v9 = vperm.slane %v2502_v30, 6 }
 0x10b   :  { %v250_v56 = vadd.f32 %v234_v26, %v225_v35  ;;  %v251_v58 = vadd.f32 %v235_v27, %v226_v37  ;;  %v252_v61 = vadd.f32 %v236_v28, %v227_v41  ;;  %v253_v63 = vadd.f32 %v237_v29, %v228_v43  ;;  %v2143_v29 = vld [vmem:[#allocation3 + $0xe4] sm:$0xf]  ;;  %v1655_v35 = vld [vmem:[#allocation3 + $0xe8] sm:$0xf0] }
 0x10c   :  { %v229_v26 = vmul.f32 %v213_v31, %v2486_v22  ;;  %v270_v37 = vperm.slane %v2491_v23, 5  ;;  %v1719_v41 = vld [vmem:[#allocation3 + $0x168] sm:$0xf0]  ;;  %v272_v31 = vperm.slane %v2491_v23, 7  ;;  %v2175_v43 = vld [vmem:[#allocation3 + $0x1e4] sm:$0xf] }
 0x10d   :  { %v1722_v19 = vor.u32 %v2159_v40, %v1719_v41  ;;  %v1567_v41 = vld [vmem:[#allocation3 + $0x38] sm:$0xf0] }
 0x11f   :  { %v2524_v49 = vpop.permute.xlu1 %300  ;;  %v2526_v50 = vpop.permute.xlu0 %261 }
 0x120   :  { %v281_v57 = vmul.f32 %v265_v36, %v2526_v50  ;;  %v282_v59 = vmul.f32 %v266_v38, %v2526_v50  ;;  %v283_v62 = vmul.f32 %v267_v42, %v2526_v50  ;;  %v284_v0 = vmul.f32 %v268_v44, %v2526_v50  ;;  %v1783_v44 = vld [vmem:[#allocation3 + $0x1e8] sm:$0xf0] }
 0x121   :  { %v320_v5 = vmul.f32 %v304_v45, %v2524_v49  ;;  %v321_v7 = vmul.f32 %v305_v46, %v2524_v49  ;;  %v322_v11 = vmul.f32 %v306_v52, %v2524_v49  ;;  %v323_v13 = vmul.f32 %v307_v53, %v2524_v49 }
 0x122   :  { %v289_v4 = vadd.f32 %v281_v57, %v250_v56  ;;  %v290_v6 = vadd.f32 %v282_v59, %v251_v58  ;;  %v291_v10 = vadd.f32 %v283_v62, %v252_v61  ;;  %v292_v12 = vadd.f32 %v284_v0, %v253_v63  ;;  %v2125_v57 = vld [vmem:[#allocation3 + $0x54] sm:$0xf]  ;;  %v1711_v62 = vld [vmem:[#allocation3 + $0x158] sm:$0xf0] }
 0x123   :  { %v269_v36 = vperm.slane %v2491_v23, 4  ;;  %v271_v42 = vperm.slane %v2491_v23, 6  ;;  %v230_v45 = vmul.f32 %v214_v33, %v2486_v22  ;;  %v231_v46 = vmul.f32 %v215_v47, %v2486_v22  ;;  %v1583_v33 = vld [vmem:[#allocation3 + $0x58] sm:$0xf0]  ;;  %v2141_v59 = vld [vmem:[#allocation3 + $0xd4] sm:$0xf] }
 0x124   :  { %v328_v14 = vadd.f32 %v320_v5, %v289_v4  ;;  %v329_v15 = vadd.f32 %v321_v7, %v290_v6  ;;  %v330_v18 = vadd.f32 %v322_v11, %v291_v10  ;;  %v331_v54 = vadd.f32 %v323_v13, %v292_v12  ;;  %v1647_v47 = vld [vmem:[#allocation3 + $0xd8] sm:$0xf0]  ;;  %v2157_v61 = vld [vmem:[#allocation3 + $0x154] sm:$0xf]  ;;  %v1575_v11 = vld [vmem:[#allocation3 + $0x48] sm:$0xf0] }
 0x125   :  { %v232_v52 = vmul.f32 %v216_v51, %v2486_v22  ;;  %v241_v53 = vperm.slane %v2482_v20, 7  ;;  %v1594_v23 = vor.u32 %v2127_v24, %v1591_v25  ;;  %v1658_v56 = vor.u32 %v2143_v29, %v1655_v35  ;;  %v2139_v12 = vld [vmem:[#allocation3 + $0xc4] sm:$0xf]  ;;  %v1639_v13 = vld [vmem:[#allocation3 + $0xc8] sm:$0xf0] }
 0x126   :  { %v2542_v27 = vpack.c.bf16 %v328_v14, %v328_v14  ;;  %v2544_v28 = vpack.c.bf16 %v329_v15, %v329_v15  ;;  %v2548_v38 = vpack.c.bf16 %v330_v18, %v330_v18  ;;  %v2550_v39 = vpack.c.bf16 %v331_v54, %v331_v54  ;;  %v1703_v15 = vld [vmem:[#allocation3 + $0x148] sm:$0xf0]  ;;  %v2171_v18 = vld [vmem:[#allocation3 + $0x1c4] sm:$0xf]  ;;  %v2121_v35 = vld [vmem:[#allocation3 + $0x34] sm:$0xf] }
 0x127   :  { %v254_v58 = vadd.f32 %v238_v32, %v229_v26  ;;  %v285_v22 = vmul.f32 %v269_v36, %v2526_v50  ;;  %v286_v51 = vmul.f32 %v270_v37, %v2526_v50  ;;  %v1786_v60 = vor.u32 %v2175_v43, %v1783_v44  ;;  %v1767_v54 = vld [vmem:[#allocation3 + $0x1c8] sm:$0xf0] }
 0x128   :  { %1127 = vmatmul.bf16.vlgmr.msra.gmra.mxu0 %v2542_v27  ;;  %1140 = vmatmul.bf16.vlgmr.msra.gmra.mxu1 %v2544_v28  ;;  %v308_v63 = vperm.slane %v2502_v30, 4  ;;  %v287_v0 = vmul.f32 %v271_v42, %v2526_v50  ;;  %v288_v32 = vmul.f32 %v272_v31, %v2526_v50  ;;  %v255_v2 = vadd.f32 %v239_v34, %v230_v45  ;;  %v2137_v42 = vld [vmem:[#allocation3 + $0xb4] sm:$0xf]  ;;  %v1631_v31 = vld [vmem:[#allocation3 + $0xb8] sm:$0xf0] }
 0x129   :  { %1153 = vmatmul.bf16.vlgmr.msra.gmra.mxu2 %v2548_v38  ;;  %1166 = vmatmul.bf16.vlgmr.msra.gmra.mxu3 %v2550_v39  ;;  %v256_v4 = vadd.f32 %v240_v48, %v231_v46  ;;  %v257_v5 = vadd.f32 %v241_v53, %v232_v52  ;;  %v1586_v6 = vor.u32 %v2125_v57, %v1583_v33  ;;  %v311_v10 = vperm.slane %v2502_v30, 7  ;;  %v2155_v48 = vld [vmem:[#allocation3 + $0x144] sm:$0xf]  ;;  %v2153_v46 = vld [vmem:[#allocation3 + $0x134] sm:$0xf] }
 0x12a   :  { %1223 = vmatpush.bf16.msra.mxu0 %v1602_v55  ;;  %1236 = vmatpush.bf16.msra.mxu1 %v1666_v16  ;;  %v2173_v55 = vld [vmem:[#allocation3 + $0x1d4] sm:$0xf]  ;;  %v1650_v7 = vor.u32 %v2141_v59, %v1647_v47  ;;  %v1714_v50 = vor.u32 %v2157_v61, %v1711_v62  ;;  %v293_v34 = vadd.f32 %v285_v22, %v254_v58  ;;  %v1695_v52 = vld [vmem:[#allocation3 + $0x138] sm:$0xf0]  ;;  %v2119_v33 = vld [vmem:[#allocation3 + $0x24] sm:$0xf] }
 0x12b   :  { %1249 = vmatpush.bf16.msra.mxu2 %v1730_v17  ;;  %1262 = vmatpush.bf16.msra.mxu3 %v1794_v21  ;;  %v294_v14 = vadd.f32 %v286_v51, %v255_v2  ;;  %v1778_v20 = vor.u32 %v2173_v55, %v1775_v1  ;;  %v295_v16 = vadd.f32 %v287_v0, %v256_v4  ;;  %v2169_v53 = vld [vmem:[#allocation3 + $0x1b4] sm:$0xf]  ;;  %v1559_v59 = vld [vmem:[#allocation3 + $0x28] sm:$0xf0]  ;;  %v2151_v62 = vld [vmem:[#allocation3 + $0x124] sm:$0xf] }
 0x12c   :  { %v296_v17 = vadd.f32 %v288_v32, %v257_v5  ;;  %v324_v21 = vmul.f32 %v308_v63, %v2524_v49  ;;  %v325_v30 = vmul.f32 %v309_v3, %v2524_v49  ;;  %v1578_v24 = vor.u32 %v2123_v8, %v1575_v11  ;;  %v1623_v61 = vld [vmem:[#allocation3 + $0xa8] sm:$0xf0]  ;;  %v2167_v0 = vld [vmem:[#allocation3 + $0x1a4] sm:$0xf]  ;;  %v2117_v2 = vld [vmem:[#allocation3 + $0x14] sm:$0xf] }
 0x12d   :  { %v1642_v25 = vor.u32 %v2139_v12, %v1639_v13  ;;  %v326_v26 = vmul.f32 %v310_v9, %v2524_v49  ;;  %v327_v29 = vmul.f32 %v311_v10, %v2524_v49  ;;  %v1706_v36 = vor.u32 %v2155_v48, %v1703_v15  ;;  %v1687_v63 = vld [vmem:[#allocation3 + $0x128] sm:$0xf0]  ;;  %v1551_v3 = vld [vmem:[#allocation3 + $0x18] sm:$0xf0]  ;;  %v2149_v8 = vld [vmem:[#allocation3 + $0x114] sm:$0xf] }
 0x12e   :  { %1224 = vmatpush.bf16.msra.mxu0 %v1594_v23  ;;  %1237 = vmatpush.bf16.msra.mxu1 %v1658_v56  ;;  %v332_v37 = vadd.f32 %v324_v21, %v293_v34  ;;  %v333_v40 = vadd.f32 %v325_v30, %v294_v14  ;;  %v1770_v43 = vor.u32 %v2171_v18, %v1767_v54  ;;  %v1759_v23 = vld [vmem:[#allocation3 + $0x1b8] sm:$0xf0]  ;;  %v1751_v32 = vld [vmem:[#allocation3 + $0x1a8] sm:$0xf0]  ;;  %v2165_v10 = vld [vmem:[#allocation3 + $0x194] sm:$0xf] }
 0x12f   :  { %1250 = vmatpush.bf16.msra.mxu2 %v1722_v19  ;;  %1263 = vmatpush.bf16.msra.mxu3 %v1786_v60  ;;  %v334_v44 = vadd.f32 %v326_v26, %v295_v16  ;;  %v335_v45 = vadd.f32 %v327_v29, %v296_v17  ;;  %v1570_v56 = vor.u32 %v2121_v35, %v1567_v41  ;;  %v2135_v60 = vld [vmem:[#allocation3 + $0xa4] sm:$0xf]  ;;  %v1679_v9 = vld [vmem:[#allocation3 + $0x118] sm:$0xf0]  ;;  %v1543_v34 = vld [vmem:[#allocation3 + $0x8] sm:$0xf0] }
 0x130   :  { %v1634_v49 = vor.u32 %v2137_v42, %v1631_v31  ;;  %v2582_v57 = vpack.c.bf16 %v332_v37, %v332_v37  ;;  %v2584_v58 = vpack.c.bf16 %v333_v40, %v333_v40  ;;  %v1698_v19 = vor.u32 %v2153_v46, %v1695_v52  ;;  %v2115_v11 = vld [vmem:[#allocation3 + $0x4] sm:$0xf]  ;;  %v1671_v17 = vld [vmem:[#allocation3 + $0x108] sm:$0xf0]  ;;  %v2193_v21 = vld [vmem:[#allocation3 + $0x274] sm:$0xf] }
 0x131   :  { %v2586_v47 = vpack.c.bf16 %v334_v44, %v334_v44  ;;  %v2588_v22 = vpack.c.bf16 %v335_v45, %v335_v45  ;;  %v1762_v51 = vor.u32 %v2169_v53, %v1759_v23  ;;  %v1562_v55 = vor.u32 %v2119_v33, %v1559_v59  ;;  %v2131_v14 = vld [vmem:[#allocation3 + $0x84] sm:$0xf]  ;;  %v1735_v54 = vld [vmem:[#allocation3 + $0x188] sm:$0xf0]  ;;  %v1855_v30 = vld [vmem:[#allocation3 + $0x278] sm:$0xf0] }
 0x132   :  { %1225 = vmatpush.bf16.msra.mxu0 %v1586_v6  ;;  %1238 = vmatpush.bf16.msra.mxu1 %v1650_v7  ;;  %v1626_v1 = vor.u32 %v2135_v60, %v1623_v61  ;;  %v1690_v4 = vor.u32 %v2151_v62, %v1687_v63  ;;  %v1754_v5 = vor.u32 %v2167_v0, %v1751_v32  ;;  %v2133_v6 = vld [vmem:[#allocation3 + $0x94] sm:$0xf]  ;;  %v1615_v7 = vld [vmem:[#allocation3 + $0x98] sm:$0xf0]  ;;  %v2147_v16 = vld [vmem:[#allocation3 + $0x104] sm:$0xf] }
 0x133   :  { %1251 = vmatpush.bf16.msra.mxu2 %v1714_v50  ;;  %1264 = vmatpush.bf16.msra.mxu3 %v1778_v20  ;;  %v1743_v50 = vld [vmem:[#allocation3 + $0x198] sm:$0xf0]  ;;  %v1554_v12 = vor.u32 %v2117_v2, %v1551_v3  ;;  %v1618_v13 = vor.u32 %v2133_v6, %v1615_v7  ;;  %v1607_v20 = vld [vmem:[#allocation3 + $0x88] sm:$0xf0]  ;;  %v1682_v48 = vor.u32 %v2149_v8, %v1679_v9  ;;  %v2163_v18 = vld [vmem:[#allocation3 + $0x184] sm:$0xf] }
 0x134   :  { %v1746_v15 = vor.u32 %v2165_v10, %v1743_v50  ;;  %v2225_v26 = vld [vmem:[#allocation3 + $0x374] sm:$0xf]  ;;  %v1546_v29 = vor.u32 %v2115_v11, %v1543_v34  ;;  %v1610_v35 = vor.u32 %v2131_v14, %v1607_v20  ;;  %v2047_v40 = vld [vmem:[#allocation3 + $0x3f8] sm:$0xf0]  ;;  %v1674_v41 = vor.u32 %v2147_v16, %v1671_v17  ;;  %v2191_v44 = vld [vmem:[#allocation3 + $0x264] sm:$0xf] }
 0x135   :  { %v2241_v37 = vld [vmem:[#allocation3 + $0x3f4] sm:$0xf]  ;;  %v1738_v42 = vor.u32 %v2163_v18, %v1735_v54  ;;  %v1858_v31 = vor.u32 %v2193_v21, %v1855_v30  ;;  %v1847_v45 = vld [vmem:[#allocation3 + $0x268] sm:$0xf0]  ;;  %v2207_v53 = vld [vmem:[#allocation3 + $0x2e4] sm:$0xf] }
 0x136   :  { %1226 = vmatpush.bf16.msra.mxu0 %v1578_v24  ;;  %1239 = vmatpush.bf16.msra.mxu1 %v1642_v25  ;;  %v2209_v24 = vld [vmem:[#allocation3 + $0x2f4] sm:$0xf]  ;;  %v1919_v25 = vld [vmem:[#allocation3 + $0x2f8] sm:$0xf0]  ;;  %v2050_v52 = vor.u32 %v2241_v37, %v2047_v40  ;;  %v1911_v23 = vld [vmem:[#allocation3 + $0x2e8] sm:$0xf0]  ;;  %v1850_v59 = vor.u32 %v2191_v44, %v1847_v45 }
 0x137   :  { %1252 = vmatpush.bf16.msra.mxu2 %v1706_v36  ;;  %1265 = vmatpush.bf16.msra.mxu3 %v1770_v43  ;;  %v1983_v36 = vld [vmem:[#allocation3 + $0x378] sm:$0xf0]  ;;  %v1922_v43 = vor.u32 %v2209_v24, %v1919_v25  ;;  %v2039_v33 = vld [vmem:[#allocation3 + $0x3e8] sm:$0xf0]  ;;  %v2189_v60 = vld [vmem:[#allocation3 + $0x254] sm:$0xf] }
 0x138   :  { %1179 = vmatmul.bf16.vlgmr.msrb.gmra.mxu0 %v2582_v57  ;;  %1192 = vmatmul.bf16.vlgmr.msrb.gmra.mxu1 %v2584_v58  ;;  %v1986_v46 = vor.u32 %v2225_v26, %v1983_v36  ;;  %v1839_v61 = vld [vmem:[#allocation3 + $0x258] sm:$0xf0]  ;;  %v2205_v0 = vld [vmem:[#allocation3 + $0x2d4] sm:$0xf]  ;;  %v2187_v6 = vld [vmem:[#allocation3 + $0x244] sm:$0xf] }
 0x139   :  { %1205 = vmatmul.bf16.vlgmr.msrb.gmra.mxu2 %v2586_v47  ;;  %1218 = vmatmul.bf16.vlgmr.msrb.gmra.mxu3 %v2588_v22  ;;  %v1903_v32 = vld [vmem:[#allocation3 + $0x2d8] sm:$0xf0]  ;;  %v2237_v2 = vld [vmem:[#allocation3 + $0x3d4] sm:$0xf]  ;;  %v1831_v7 = vld [vmem:[#allocation3 + $0x248] sm:$0xf0] }
 0x13a   :  { %1227 = vmatpush.bf16.msra.mxu0 %v1570_v56  ;;  %1240 = vmatpush.bf16.msra.mxu1 %v1634_v49  ;;  %v2223_v56 = vld [vmem:[#allocation3 + $0x364] sm:$0xf]  ;;  %v1975_v49 = vld [vmem:[#allocation3 + $0x368] sm:$0xf0]  ;;  %v2031_v3 = vld [vmem:[#allocation3 + $0x3d8] sm:$0xf0] }
 0x13b   :  { %1253 = vmatpush.bf16.msra.mxu2 %v1698_v19  ;;  %1266 = vmatpush.bf16.msra.mxu3 %v1762_v51  ;;  %v2239_v19 = vld [vmem:[#allocation3 + $0x3e4] sm:$0xf]  ;;  %v1914_v51 = vor.u32 %v2207_v53, %v1911_v23  ;;  %v1978_v62 = vor.u32 %v2223_v56, %v1975_v49  ;;  %v2034_v9 = vor.u32 %v2237_v2, %v2031_v3  ;;  %v1895_v10 = vld [vmem:[#allocation3 + $0x2c8] sm:$0xf0]  ;;  %v1823_v34 = vld [vmem:[#allocation3 + $0x238] sm:$0xf0] }
 0x13c   :  { %v2042_v63 = vor.u32 %v2239_v19, %v2039_v33  ;;  %v1959_v50 = vld [vmem:[#allocation3 + $0x348] sm:$0xf0]  ;;  %v2235_v11 = vld [vmem:[#allocation3 + $0x3c4] sm:$0xf]  ;;  %v2217_v16 = vld [vmem:[#allocation3 + $0x334] sm:$0xf] }
 0x13d   :  { %v1951_v17 = vld [vmem:[#allocation3 + $0x338] sm:$0xf0]  ;;  %v2233_v18 = vld [vmem:[#allocation3 + $0x3b4] sm:$0xf]  ;;  %v2183_v24 = vld [vmem:[#allocation3 + $0x224] sm:$0xf] }
 0x13e   :  { %1228 = vmatpush.bf16.msra.mxu0 %v1562_v55  ;;  %1241 = vmatpush.bf16.msra.mxu1 %v1626_v1  ;;  %v2221_v55 = vld [vmem:[#allocation3 + $0x354] sm:$0xf]  ;;  %v1967_v1 = vld [vmem:[#allocation3 + $0x358] sm:$0xf0]  ;;  %v1815_v25 = vld [vmem:[#allocation3 + $0x228] sm:$0xf0]  ;;  %v1954_v26 = vor.u32 %v2217_v16, %v1951_v17 }
 0x13f   :  { %1254 = vmatpush.bf16.msra.mxu2 %v1690_v4  ;;  %1267 = vmatpush.bf16.msra.mxu3 %v1754_v5  ;;  %v1842_v4 = vor.u32 %v2189_v60, %v1839_v61  ;;  %v1906_v5 = vor.u32 %v2205_v0, %v1903_v32  ;;  %v1970_v8 = vor.u32 %v2221_v55, %v1967_v1  ;;  %v2015_v54 = vld [vmem:[#allocation3 + $0x3b8] sm:$0xf0]  ;;  %v1879_v36 = vld [vmem:[#allocation3 + $0x2a8] sm:$0xf0]  ;;  %v2215_v37 = vld [vmem:[#allocation3 + $0x324] sm:$0xf] }
 0x140   :  { %v1943_v40 = vld [vmem:[#allocation3 + $0x328] sm:$0xf0]  ;;  %v2181_v44 = vld [vmem:[#allocation3 + $0x214] sm:$0xf]  ;;  %v1807_v45 = vld [vmem:[#allocation3 + $0x218] sm:$0xf0] }
 0x141   :  { %v2197_v53 = vld [vmem:[#allocation3 + $0x294] sm:$0xf]  ;;  %v1871_v23 = vld [vmem:[#allocation3 + $0x298] sm:$0xf0]  ;;  %v2179_v60 = vld [vmem:[#allocation3 + $0x204] sm:$0xf] }
 0x142   :  { %1229 = vmatpush.bf16.msra.mxu0 %v1554_v12  ;;  %1242 = vmatpush.bf16.msra.mxu1 %v1618_v13  ;;  %v2023_v12 = vld [vmem:[#allocation3 + $0x3c8] sm:$0xf0]  ;;  %v2185_v13 = vld [vmem:[#allocation3 + $0x234] sm:$0xf]  ;;  %v1935_v49 = vld [vmem:[#allocation3 + $0x318] sm:$0xf0] }
 0x143   :  { %1255 = vmatpush.bf16.msra.mxu2 %v1682_v48  ;;  %1268 = vmatpush.bf16.msra.mxu3 %v1746_v15  ;;  %v2026_v20 = vor.u32 %v2235_v11, %v2023_v12  ;;  %v2201_v48 = vld [vmem:[#allocation3 + $0x2b4] sm:$0xf]  ;;  %v1887_v15 = vld [vmem:[#allocation3 + $0x2b8] sm:$0xf0]  ;;  %v1826_v21 = vor.u32 %v2185_v13, %v1823_v34  ;;  %v1799_v61 = vld [vmem:[#allocation3 + $0x208] sm:$0xf0] }
 0x144   :  { %v1890_v30 = vor.u32 %v2201_v48, %v1887_v15  ;;  %v2213_v56 = vld [vmem:[#allocation3 + $0x314] sm:$0xf]  ;;  %v1999_v33 = vld [vmem:[#allocation3 + $0x398] sm:$0xf0]  ;;  %v2195_v0 = vld [vmem:[#allocation3 + $0x284] sm:$0xf] }
 0x145   :  { %v2229_v19 = vld [vmem:[#allocation3 + $0x394] sm:$0xf]  ;;  %v1863_v32 = vld [vmem:[#allocation3 + $0x288] sm:$0xf0]  ;;  %v2211_v55 = vld [vmem:[#allocation3 + $0x304] sm:$0xf] }
 0x146   :  { %1230 = vmatpush.bf16.msra.mxu0 %v1546_v29  ;;  %1243 = vmatpush.bf16.msra.mxu1 %v1610_v35  ;;  %v2018_v29 = vor.u32 %v2233_v18, %v2015_v54  ;;  %v2199_v35 = vld [vmem:[#allocation3 + $0x2a4] sm:$0xf]  ;;  %v1927_v1 = vld [vmem:[#allocation3 + $0x308] sm:$0xf0]  ;;  %v2258_v15 = vld [vmem:[#allocation6 + $0x78] sm:$0xff] }
 0x147   :  { %1256 = vmatpush.bf16.msra.mxu2 %v1674_v41  ;;  %1269 = vmatpush.bf16.msra.mxu3 %v1738_v42  ;;  %v2231_v41 = vld [vmem:[#allocation3 + $0x3a4] sm:$0xf]  ;;  %v2007_v42 = vld [vmem:[#allocation3 + $0x3a8] sm:$0xf0] }
 0x148   :  { %v2227_v2 = vld [vmem:[#allocation3 + $0x384] sm:$0xf]  ;;  %v1991_v3 = vld [vmem:[#allocation3 + $0x388] sm:$0xf0] }
 0x149   :  { %1231 = vmatmul.bf16.vlgmr.msra.gmra.mxu0 %v2542_v27  ;;  %1244 = vmatmul.bf16.vlgmr.msra.gmra.mxu1 %v2544_v28  ;;  %v2203_v27 = vld [vmem:[#allocation3 + $0x2c4] sm:$0xf]  ;;  %v2244_v11 = vld [vmem:[#allocation6 + $0x8] sm:$0xff] }
 0x14a   :  { %1275 = vmatpush.bf16.msrb.mxu0 %v1858_v31  ;;  %1288 = vmatpush.bf16.msrb.mxu1 %v1922_v43  ;;  %v2219_v28 = vld [vmem:[#allocation3 + $0x344] sm:$0xf]  ;;  %v1818_v31 = vor.u32 %v2183_v24, %v1815_v25  ;;  %v1882_v43 = vor.u32 %v2199_v35, %v1879_v36  ;;  %v2256_v25 = vld [vmem:[#allocation6 + $0x68] sm:$0xff] }
 0x14b   :  { %1301 = vmatpush.bf16.msrb.mxu2 %v1986_v46  ;;  %1314 = vmatpush.bf16.msrb.mxu3 %v2050_v52  ;;  %v1962_v14 = vor.u32 %v2219_v28, %v1959_v50  ;;  %v1946_v46 = vor.u32 %v2215_v37, %v1943_v40  ;;  %v2010_v52 = vor.u32 %v2231_v41, %v2007_v42  ;;  %v2246_v28 = vld [vmem:[#allocation6 + $0x18] sm:$0xff]  ;;  %v2245_v50 = vld [vmem:[#allocation6 + $0x10] sm:$0xff]  ;;  %v2255_v36 = vld [vmem:[#allocation6 + $0x60] sm:$0xff] }
 0x14c   :  { %1257 = vmatmul.bf16.vlgmr.msra.gmra.mxu2 %v2548_v38  ;;  %1270 = vmatmul.bf16.vlgmr.msra.gmra.mxu3 %v2550_v39  ;;  %v1834_v38 = vor.u32 %v2187_v6, %v1831_v7  ;;  %v1898_v39 = vor.u32 %v2203_v27, %v1895_v10  ;;  %v1930_v6 = vor.u32 %v2211_v55, %v1927_v1  ;;  %v2248_v27 = vld [vmem:[#allocation6 + $0x28] sm:$0xff]  ;;  %v2247_v10 = vld [vmem:[#allocation6 + $0x20] sm:$0xff] }
 0x14d   :  { %v1994_v7 = vor.u32 %v2227_v2, %v1991_v3 }
 0x14e   :  { %1276 = vmatpush.bf16.msrb.mxu0 %v1850_v59  ;;  %1289 = vmatpush.bf16.msrb.mxu1 %v1914_v51  ;;  %v1810_v59 = vor.u32 %v2181_v44, %v1807_v45  ;;  %v1874_v51 = vor.u32 %v2197_v53, %v1871_v23  ;;  %v2254_v53 = vld [vmem:[#allocation6 + $0x58] sm:$0xff]  ;;  %v2253_v23 = vld [vmem:[#allocation6 + $0x50] sm:$0xff] }
 0x14f   :  { %1302 = vmatpush.bf16.msrb.mxu2 %v1978_v62  ;;  %1315 = vmatpush.bf16.msrb.mxu3 %v2042_v63  ;;  %v1938_v62 = vor.u32 %v2213_v56, %v1935_v49  ;;  %v2002_v63 = vor.u32 %v2229_v19, %v1999_v33 }
 0x152   :  { %1277 = vmatpush.bf16.msrb.mxu0 %v1842_v4  ;;  %1290 = vmatpush.bf16.msrb.mxu1 %v1906_v5  ;;  %v1802_v4 = vor.u32 %v2179_v60, %v1799_v61  ;;  %v1866_v5 = vor.u32 %v2195_v0, %v1863_v32 }
 0x153   :  { %1303 = vmatpush.bf16.msrb.mxu2 %v1970_v8  ;;  %1316 = vmatpush.bf16.msrb.mxu3 %v2034_v9  ;;  %v2250_v8 = vld [vmem:[#allocation6 + $0x38] sm:$0xff]  ;;  %v2249_v9 = vld [vmem:[#allocation6 + $0x30] sm:$0xff] }
 0x156   :  { %1278 = vmatpush.bf16.msrb.mxu0 %v1834_v38  ;;  %1291 = vmatpush.bf16.msrb.mxu1 %v1898_v39 }
 0x157   :  { %1304 = vmatpush.bf16.msrb.mxu2 %v1962_v14  ;;  %1317 = vmatpush.bf16.msrb.mxu3 %v2026_v20 }
 0x15a   :  { %1279 = vmatpush.bf16.msrb.mxu0 %v1826_v21  ;;  %1292 = vmatpush.bf16.msrb.mxu1 %v1890_v30  ;;  %v2257_v30 = vld [vmem:[#allocation6 + $0x70] sm:$0xff] }
 0x15b   :  { %1305 = vmatpush.bf16.msrb.mxu2 %v1954_v26  ;;  %1318 = vmatpush.bf16.msrb.mxu3 %v2018_v29 }
 0x15e   :  { %1280 = vmatpush.bf16.msrb.mxu0 %v1818_v31  ;;  %1293 = vmatpush.bf16.msrb.mxu1 %v1882_v43 }
 0x15f   :  { %1306 = vmatpush.bf16.msrb.mxu2 %v1946_v46  ;;  %1319 = vmatpush.bf16.msrb.mxu3 %v2010_v52 }
 0x162   :  { %1281 = vmatpush.bf16.msrb.mxu0 %v1810_v59  ;;  %1294 = vmatpush.bf16.msrb.mxu1 %v1874_v51  ;;  %v2252_v59 = vld [vmem:[#allocation6 + $0x48] sm:$0xff]  ;;  %v2251_v51 = vld [vmem:[#allocation6 + $0x40] sm:$0xff] }
 0x163   :  { %1307 = vmatpush.bf16.msrb.mxu2 %v1938_v62  ;;  %1320 = vmatpush.bf16.msrb.mxu3 %v2002_v63 }
 0x166   :  { %1282 = vmatpush.bf16.msrb.mxu0 %v1802_v4  ;;  %1295 = vmatpush.bf16.msrb.mxu1 %v1866_v5 }
 0x167   :  { %1308 = vmatpush.bf16.msrb.mxu2 %v1930_v6  ;;  %1321 = vmatpush.bf16.msrb.mxu3 %v1994_v7 }
 0x169   :  { %1283 = vmatmul.bf16.vlgmr.msrb.gmra.mxu0 %v2582_v57  ;;  %1296 = vmatmul.bf16.vlgmr.msrb.gmra.mxu1 %v2584_v58  ;;  %v1538_v57 = vld [vmem:[%s2615_s4 + $0x1] ss:$4 sm:$0x3] }
 0x16a   :  { %1309 = vmatmul.bf16.vlgmr.msrb.gmra.mxu2 %v2586_v47  ;;  %1322 = vmatmul.bf16.vlgmr.msrb.gmra.mxu3 %v2588_v22  ;;  %v2243_v22 = vld [vmem:[#allocation6] sm:$0xff]  ;;  %v475_v12 = vperm.slane %v1538_v57, 0  ;;  %v476_v60 = vperm.slane %v1538_v57, 1 }
 0x16b   :  { %1461 = vmatpush.bf16.msra.mxu0 %v2250_v8  ;;  %1474 = vmatpush.bf16.msra.mxu1 %v2258_v15 }
 0x16f   :  { %1462 = vmatpush.bf16.msra.mxu0 %v2249_v9  ;;  %1475 = vmatpush.bf16.msra.mxu1 %v2257_v30 }
 0x173   :  { %1463 = vmatpush.bf16.msra.mxu0 %v2248_v27  ;;  %1476 = vmatpush.bf16.msra.mxu1 %v2256_v25 }
 0x177   :  { %1464 = vmatpush.bf16.msra.mxu0 %v2247_v10  ;;  %1477 = vmatpush.bf16.msra.mxu1 %v2255_v36 }
 0x17b   :  { %1465 = vmatpush.bf16.msra.mxu0 %v2246_v28  ;;  %1478 = vmatpush.bf16.msra.mxu1 %v2254_v53 }
 0x17f   :  { %1466 = vmatpush.bf16.msra.mxu0 %v2245_v50  ;;  %1479 = vmatpush.bf16.msra.mxu1 %v2253_v23 }
 0x183   :  { %1467 = vmatpush.bf16.msra.mxu0 %v2244_v11  ;;  %1480 = vmatpush.bf16.msra.mxu1 %v2252_v59 }
 0x187   :  { %1468 = vmatpush.bf16.msra.mxu0 %v2243_v22  ;;  %1481 = vmatpush.bf16.msra.mxu1 %v2251_v51 }
 0x1a5   :  { %v1128_v58 = vpop.f32.mrf.mxu0  ;;  %v1141_v47 = vpop.f32.mrf.mxu1 }
 0x1a6   :  { %v1129_v38 = vadd.f32 %v1128_v58, %v475_v12 }
 0x1a8   :  { %v1142_v20 = vadd.f32 %v1141_v47, %v1129_v38  ;;  %v2276_v47 = vld [vmem:[%s2615_s4 + $0x2] ss:$0 sm:$0xff]  ;;  %s2373_s4 = smov [#allocation8]  }
 0x1a9   :  { %s1523_s7 = sshll.u32 %s2373_s4, 4  ;;  %s1524_s7 = int_to_ptr.vmem [resolvable:$true] %s1523_s7 }
 0x1ac   :  { %v1154_v39 = vpop.f32.mrf.mxu2  ;;  %v1167_v13 = vpop.f32.mrf.mxu3 }
 0x1ad   :  { %v1130_v34 = vpop.f32.mrf.mxu0  ;;  %v1143_v14 = vpop.f32.mrf.mxu1  ;;  %v1155_v48 = vadd.f32 %v1154_v39, %v1142_v20 }
 0x1af   :  { %v1168_v18 = vadd.f32 %v1167_v13, %v1155_v48 }
 0x1b4   :  { %v1156_v16 = vpop.f32.mrf.mxu2  ;;  %v1169_v17 = vpop.f32.mrf.mxu3 }
 0x1b5   :  { %v1180_v54 = vpop.f32.mrf.mxu0  ;;  %v1193_v21 = vpop.f32.mrf.mxu1 }
 0x1b6   :  { %v1181_v24 = vadd.f32 %v1180_v54, %v1168_v18 }
 0x1b8   :  { %v1194_v26 = vadd.f32 %v1193_v21, %v1181_v24 }
 0x1bc   :  { %v1206_v29 = vpop.f32.mrf.mxu2  ;;  %v1219_v35 = vpop.f32.mrf.mxu3 }
 0x1bd   :  { %v1207_v37 = vadd.f32 %v1206_v29, %v1194_v26  ;;  %v1182_v40 = vpop.f32.mrf.mxu0  ;;  %v1195_v41 = vpop.f32.mrf.mxu1 }
 0x1bf   :  { %v1220_v42 = vadd.f32 %v1219_v35, %v1207_v37 }
 0x1c1   :  { %v1327_v31 = vmax.f32 %v1220_v42, 0.0 }
 0x1c3   :  { %v1329_v43 = vpack.c.bf16 %v1327_v31, %v1327_v31 }
 0x1c4   :  { %v1208_v44 = vpop.f32.mrf.mxu2  ;;  %v1221_v45 = vpop.f32.mrf.mxu3 }
 0x1c5   :  { %1469 = vmatmul.bf16.vlgmr.msra.gmra.mxu0 %v1329_v43 }
 0x1c6   :  { %v1232_v46 = vpop.f32.mrf.mxu0  ;;  %v1245_v52 = vpop.f32.mrf.mxu1 }
 0x1c7   :  { %v1233_v63 = vadd.f32 %v1232_v46, %v476_v60 }
 0x1c9   :  { %v1246_v0 = vadd.f32 %v1245_v52, %v1233_v63 }
 0x1ce   :  { %v1234_v19 = vpop.f32.mrf.mxu0  ;;  %v1247_v33 = vpop.f32.mrf.mxu1 }
 0x1cf   :  { %v1258_v56 = vpop.f32.mrf.mxu2  ;;  %v1271_v49 = vpop.f32.mrf.mxu3 }
 0x1d0   :  { %v1259_v32 = vadd.f32 %v1258_v56, %v1246_v0 }
 0x1d2   :  { %v1272_v55 = vadd.f32 %v1271_v49, %v1259_v32 }
 0x1d7   :  { %v1260_v61 = vpop.f32.mrf.mxu2  ;;  %v1273_v62 = vpop.f32.mrf.mxu3 }
 0x1e6   :  { %v1284_v1 = vpop.f32.mrf.mxu0  ;;  %v1297_v2 = vpop.f32.mrf.mxu1 }
 0x1e7   :  { %v1285_v3 = vadd.f32 %v1284_v1, %v1272_v55 }
 0x1e9   :  { %v1298_v4 = vadd.f32 %v1297_v2, %v1285_v3 }
 0x1ed   :  { %v1310_v5 = vpop.f32.mrf.mxu2  ;;  %v1323_v6 = vpop.f32.mrf.mxu3 }
 0x1ee   :  { %v1311_v7 = vadd.f32 %v1310_v5, %v1298_v4  ;;  %v1286_v8 = vpop.f32.mrf.mxu0  ;;  %v1299_v9 = vpop.f32.mrf.mxu1 }
 0x1f0   :  { %v1324_v27 = vadd.f32 %v1323_v6, %v1311_v7 }
 0x1f2   :  { %v1328_v10 = vmax.f32 %v1324_v27, 0.0 }
 0x1f4   :  { %v1330_v28 = vpack.c.bf16 %v1328_v10, %v1328_v10 }
 0x1f5   :  { %v1312_v50 = vpop.f32.mrf.mxu2  ;;  %v1325_v11 = vpop.f32.mrf.mxu3 }
 0x1f6   :  { %1482 = vmatmul.bf16.vlgmr.msra.gmra.mxu1 %v1330_v28 }
 0x242   :  { %v1470_v57 = vpop.f32.mrf.mxu0 }
 0x243   :  { %v1471_v22 = vadd.f32 %v2276_v47, %v1470_v57 }
 0x24a   :  { %v1472_v58 = vpop.f32.mrf.mxu0 }
 0x273   :  { %v1483_v12 = vpop.f32.mrf.mxu1 }
 0x274   :  { %v1484_v38 = vadd.f32 %v1483_v12, %v1471_v22 }
 0x276   :  { %v1487_v39 = vmax.f32 %v1484_v38, 0.0 }
 0x278   :  { %1489 = vrot.lane.b32.xlu2 %v1487_v39, %s2371_s6 }
 0x27b   :  { %v1485_v13 = vpop.f32.mrf.mxu1 }
 0x2d2   :  { %v1490_v34 = vpop.permute.xlu2 %1489 }
 0x2d3   :  { %v1492_v14 = vmax.f32 %v1487_v39, %v1490_v34 }
 0x2d5   :  { %1497 = vrot.lane.b32.xlu2 %v1492_v14, %s2372_s2  ;;  %v1493_v17 = vsub.f32 %v1487_v39, %v1492_v14 }
 0x2d7   :  { %v1494_v18 = vmul.f32 1.442695, %v1493_v17 }
 0x32f   :  { %v1498_v20 = vpop.permute.xlu2 %1497 }
 0x330   :  { %v1500_v48 = vsub.f32 %v1487_v39, %v1498_v20 }
 0x332   :  { %v1501_v15 = vmul.f32 1.442695, %v1500_v48 }
 0x334   :  { %2277 = vpow2.f32 %v1501_v15 }
 0x335   :  { %2279 = vpow2.f32 %v1494_v18 }
 0x33a   :  { %v2278_v16 = vpop.eup %2277 }
 0x33b   :  { %1504 = vrot.lane.b32.xlu1 %v2278_v16, %s2371_s6  ;;  %v2280_v54 = vpop.eup %2279 }
 0x3ad   :  { %v1505_v21 = vpop.permute.xlu1 %1504 }
 0x3ae   :  { %v1507_v30 = vadd.f32 %v2280_v54, %v1505_v21 }
 0x3b0   :  { %2281 = vlog2.f32 %v1507_v30 }
 0x3b6   :  { %v2282_v24 = vpop.eup %2281 }
 0x3b7   :  { %v1509_v25 = vmul.f32 0.6931472, %v2282_v24 }
 0x3b9   :  { %v1510_v26 = vadd.f32 %v1509_v25, %v1492_v14 }
 0x3bb   :  { %1513 = vperm.xlu2 %2272, %v1510_v26  }
 0x415   :  { %v1514_v29 = vpop.permute.xlu2 %1513 }
 0x416   :  { %v1516_v35 = vsub.f32 %v1487_v39, %v1514_v29 }
 0x418   :  { %1517 = vst [vmem:[#allocation8] sm:$0xff] %v1516_v35 }
 0x419   :  { %1528 = dma.vmem_to_hbm [thread:$0]  %s1524_s7, 128, %s1526_s9, [#allocation5]  }
 0x41a   :  { %2359 = dma.done.wait [#allocation5], 128  }
 0x41b   :  { %2360 = vsyncadd [#allocation5], 4294967168 }
 0x41c   :  { %1533 = vsyncpa [#allocation4], 1 }
 0x41d   :  { %1534 = vsyncpa [#allocation7], 1 }
 0x41e   :  { %1535 = vsyncpa [#allocation5], 1 }

</bundles_post_ra>
